<compile_context>
chip_gen: v6e
topology: v6e:2x2x1
jax: 0.10.0
libtpu: 0.0.40
codegen_flags: <defaults>
</compile_context>

<pallas_src>
import functools
import math

import jax
import jax.numpy as jnp
from jax.experimental import pallas as pl
from jax.experimental.pallas import tpu as pltpu

_HIDDEN = (256, 512, 1024)
_LANE = 128
_SUBLANE = 8


def _round_up(x, m):
    return (x + m - 1) // m * m


def _tpu_generation():
    try:
        kind = jax.devices()[0].device_kind.lower()
    except Exception:
        return 0
    if "v7" in kind or "tpu7" in kind:
        return 7
    if "v6" in kind:
        return 6
    if "v5" in kind:
        return 5
    if "v4" in kind:
        return 4
    return 0


def _vmem_capacity_bytes(gen):
    try:
        return int(pltpu.get_tpu_info().vmem_capacity_bytes)
    except Exception:
        return (64 << 20) if gen >= 7 else (128 << 20)


def _use_bf16_tanh():
    # bf16 EUP path exists on v6e/v7x; keep f32 tanh on v5e / unknown chips.
    return _tpu_generation() >= 6


# Feature probe: single-buffered resident blocks (pipeline_mode=Buffered(1)).
try:
    pl.BlockSpec((_SUBLANE, _LANE), lambda i: (0, 0), pipeline_mode=pl.Buffered(1))
    _SINGLE_BUFFER_OK = True
except Exception:  # older jax without pipeline_mode / Buffered
    _SINGLE_BUFFER_OK = False


def _resident_spec(arr):
    """Whole array, same block every grid step -> held VMEM-resident."""
    idx = lambda i: (0, 0)
    if _SINGLE_BUFFER_OK:
        # Constant blocks never change; don't double-buffer them.
        return pl.BlockSpec(arr.shape, idx, pipeline_mode=pl.Buffered(1))
    return pl.BlockSpec(arr.shape, idx)


def _leaky_relu(h):
    # single VPU max instead of compare + select
    return jnp.maximum(h, 0.2 * h)


def _make_generator_kernel(out_pad, out_chunk, tanh_bf16):
    n_chunks = out_pad // out_chunk

    def kernel(x_ref,
               w1_ref, b1_ref,
               w2_ref, b2_ref,
               w3_ref, b3_ref,
               w4_ref, b4_ref,
               o_ref):
        # fc1..fc3: bf16 MXU inputs, f32 accumulation + f32 bias/LeakyReLU.
        h = _leaky_relu(
            jnp.dot(x_ref[...].astype(jnp.bfloat16), w1_ref[...],
                    preferred_element_type=jnp.float32) + b1_ref[...])
        h = _leaky_relu(
            jnp.dot(h.astype(jnp.bfloat16), w2_ref[...],
                    preferred_element_type=jnp.float32) + b2_ref[...])
        h = _leaky_relu(
            jnp.dot(h.astype(jnp.bfloat16), w3_ref[...],
                    preferred_element_type=jnp.float32) + b3_ref[...])
        h = h.astype(jnp.bfloat16)

        # fc4 + tanh, chunked along N (static unrolled loop, lane-aligned
        # static slices) so the tanh/cast/store tail of chunk c overlaps the
        # MXU matmul of chunk c+1.
        for c in range(n_chunks):
            lo = c * out_chunk
            hc = jnp.dot(h, w4_ref[:, lo:lo + out_chunk],
                         preferred_element_type=jnp.float32)
            hc = hc + b4_ref[:, lo:lo + out_chunk]
            if tanh_bf16:
                hc = hc.astype(jnp.bfloat16)   # halves EUP pushes on v6e/v7x
            o_ref[:, lo:lo + out_chunk] = jnp.tanh(hc).astype(o_ref.dtype)

    return kernel


def init_generator_params(key, g_input_dim, g_output_dim):
    """nn.Linear-style U(-1/sqrt(fan_in), +) init.

    Weights stored as (in, out) (transpose of PyTorch's (out, in)), converted
    to bf16 ONCE here; biases stay (1, out) f32. fc1's fan_in is zero-padded
    to a multiple of 128 (lane-dense K) and fc4's fan_out to a multiple of 128
    (lane-dense output stores); both pads are mathematically inert.
    """
    dims = [g_input_dim, *_HIDDEN, g_output_dim]
    in_pad = _round_up(g_input_dim, _LANE)
    out_pad = _round_up(g_output_dim, _LANE)
    params = {}
    for i in range(4):
        fan_in, fan_out = dims[i], dims[i + 1]
        key, kw, kb = jax.random.split(key, 3)
        bound = 1.0 / math.sqrt(fan_in)
        w = jax.random.uniform(kw, (fan_in, fan_out), jnp.float32, -bound, bound)
        b = jax.random.uniform(kb, (1, fan_out), jnp.float32, -bound, bound)
        if i == 0 and fan_in != in_pad:
            w = jnp.pad(w, ((0, in_pad - fan_in), (0, 0)))
        if i == 3 and fan_out != out_pad:
            w = jnp.pad(w, ((0, 0), (0, out_pad - fan_out)))
            b = jnp.pad(b, ((0, 0), (0, out_pad - fan_out)))
        params[f"w{i + 1}"] = w.astype(jnp.bfloat16)   # one-time bf16 conversion
        params[f"b{i + 1}"] = b                        # f32 bias (f32 epilogue)
    return params


@functools.partial(jax.jit, static_argnames=("g_output_dim", "tile_b"))
def generator_forward(x, params, *, g_output_dim, tile_b=None):
    """x: (B, g_input_dim) f32 -> (B, g_output_dim) f32."""
    B, in_dim = x.shape
    in_pad = params["w1"].shape[0]
    out_pad = params["w4"].shape[1]

    gen = _tpu_generation()
    vmem_cap = _vmem_capacity_bytes(gen)
    vmem_clamp = min(int(vmem_cap * 0.8),
                     (48 << 20) if gen >= 7 else (100 << 20))

    # Generation-aware batch tile (multiple of 8 sublanes). On v7x cap at
    # ceil(B/2) so there are >=2 tiles to feed both TensorCores.
    if tile_b is None:
        tile_b = 512 if gen >= 7 else (1024 if gen in (5, 6) else 256)
    tb = min(tile_b, _round_up(B, _SUBLANE))
    if gen >= 7 and B > _SUBLANE:
        tb = min(tb, _round_up((B + 1) // 2, _SUBLANE))
    tb = max(tb, _SUBLANE)

    weight_bytes = sum(params[f"w{i}"].size * 2 + params[f"b{i}"].size * 4
                       for i in range(1, 5))

    def vmem_need(t):
        wb = weight_bytes * (1 if _SINGLE_BUFFER_OK else 2)
        io = 2 * t * (in_pad + out_pad) * 4               # double-buffered x/out
        act = t * (in_pad + sum(_HIDDEN) + out_pad) * 4   # f32 intermediates
        act_b = t * (in_pad + sum(_HIDDEN)) * 2           # bf16 MXU-input copies
        return wb + io + act + act_b + (4 << 20)          # headroom

    while tb > _SUBLANE and vmem_need(tb) > vmem_clamp:
        tb = max(_SUBLANE, _round_up(tb // 2, _SUBLANE))

    B_pad = _round_up(B, tb)
    n_tiles = B_pad // tb
    x_p = x
    if (B_pad, in_pad) != (B, in_dim):
        x_p = jnp.pad(x, ((0, B_pad - B), (0, in_pad - in_dim)))

    vmem_limit = int(min(max(vmem_need(tb), 16 << 20), vmem_clamp))

    # fc4 epilogue chunk width (lane-aligned; divides out_pad exactly).
    out_chunk = 256 if (out_pad % 256 == 0 and out_pad >= 512) else min(out_pad, _LANE)

    # v7x: shard the batch grid across both TensorCores when tiles allow.
    if gen >= 7 and n_tiles >= 2 and n_tiles % 2 == 0:
        sem = getattr(pltpu, "CORE_PARALLEL", "parallel")
    else:
        sem = "parallel"

    # Cost estimate for the XLA scheduler.
    dims = (in_pad, *_HIDDEN, out_pad)
    flops = 2 * B_pad * sum(a * b for a, b in zip(dims[:-1], dims[1:]))
    transcendentals = B_pad * out_pad
    bytes_accessed = x_p.size * 4 + weight_bytes + B_pad * out_pad * 4

    kernel = _make_generator_kernel(out_pad, out_chunk, _use_bf16_tanh())

    in_specs = [
        pl.BlockSpec((tb, in_pad), lambda i: (i, 0)),
        _resident_spec(params["w1"]), _resident_spec(params["b1"]),
        _resident_spec(params["w2"]), _resident_spec(params["b2"]),
        _resident_spec(params["w3"]), _resident_spec(params["b3"]),
        _resident_spec(params["w4"]), _resident_spec(params["b4"]),
    ]
    out_specs = pl.BlockSpec((tb, out_pad), lambda i: (i, 0))

    out = pl.pallas_call(
        kernel,
        grid=(n_tiles,),
        in_specs=in_specs,
        out_specs=out_specs,
        out_shape=jax.ShapeDtypeStruct((B_pad, out_pad), jnp.float32),
        compiler_params=pltpu.CompilerParams(
            dimension_semantics=(sem,),
            vmem_limit_bytes=vmem_limit),
        cost_estimate=pl.CostEstimate(
            flops=int(flops),
            transcendentals=int(transcendentals),
            bytes_accessed=int(bytes_accessed)),
    )(x_p,
      params["w1"], params["b1"],
      params["w2"], params["b2"],
      params["w3"], params["b3"],
      params["w4"], params["b4"])

    return out[:B, :g_output_dim]


def _pad_features(x, width):
    return x if x.shape[1] == width else jnp.pad(x, ((0, 0), (0, width - x.shape[1])))


def _reference_matched(x, params, g_output_dim):
    """Pure-JAX reference with the same bf16-in / f32-accum math as the kernel."""
    h = _pad_features(x, params["w1"].shape[0])
    for i in range(1, 5):
        h = jnp.dot(h.astype(jnp.bfloat16), params[f"w{i}"],
                    preferred_element_type=jnp.float32) + params[f"b{i}"]
        if i < 4:
            h = jnp.maximum(h, 0.2 * h)
        else:
            if _use_bf16_tanh():
                h = h.astype(jnp.bfloat16)
            h = jnp.tanh(h).astype(jnp.float32)
    return h[:, :g_output_dim]


def _reference_f32(x, params, g_output_dim):
    """Full-f32 reference (PyTorch semantics) using the same (bf16) weights."""
    h = _pad_features(x, params["w1"].shape[0])
    for i in range(1, 4):
        h = h @ params[f"w{i}"].astype(jnp.float32) + params[f"b{i}"]
        h = jnp.where(h > 0, h, 0.2 * h)
    h = h @ params["w4"].astype(jnp.float32) + params["b4"]
    return jnp.tanh(h)[:, :g_output_dim]


if __name__ == "__main__":
    key = jax.random.PRNGKey(0)
    k_param, k_x = jax.random.split(key)

    # Small shapes consistent with the module; g_output_dim=100 exercises the
    # lane-padding (100 -> 128) + slice path, g_input_dim=64 the K-padding.
    B, g_input_dim, g_output_dim = 8, 64, 100
    params = init_generator_params(k_param, g_input_dim, g_output_dim)
    x = jax.random.normal(k_x, (B, g_input_dim), jnp.float32)

    out = generator_forward(x, params, g_output_dim=g_output_dim)
    out = jax.block_until_ready(out)
    assert out.shape == (B, g_output_dim)

    ref_m = _reference_matched(x, params, g_output_dim)
    ref_f = _reference_f32(x, params, g_output_dim)
    assert jnp.allclose(out, ref_m, atol=1e-2, rtol=1e-2), \
        float(jnp.max(jnp.abs(out - ref_m)))
    assert jnp.allclose(out, ref_f, atol=3e-2, rtol=0), \
        float(jnp.max(jnp.abs(out - ref_f)))

    print("KERNEL_OK")
</pallas_src>

<mosaic_0001>
module attributes {stable_mosaic.version = 11 : i64} {
  func.func @kernel(%arg0: i32, %arg1: memref<8x128xf32, #tpu.memory_space<vmem>>, %arg2: memref<128x256xbf16, #tpu.memory_space<vmem>>, %arg3: memref<1x256xf32, #tpu.memory_space<vmem>>, %arg4: memref<256x512xbf16, #tpu.memory_space<vmem>>, %arg5: memref<1x512xf32, #tpu.memory_space<vmem>>, %arg6: memref<512x1024xbf16, #tpu.memory_space<vmem>>, %arg7: memref<1x1024xf32, #tpu.memory_space<vmem>>, %arg8: memref<1024x128xbf16, #tpu.memory_space<vmem>>, %arg9: memref<1x128xf32, #tpu.memory_space<vmem>>, %arg10: memref<8x128xf32, #tpu.memory_space<vmem>>) attributes {dimension_semantics = [#tpu.dimension_semantics<parallel>], iteration_bounds = array<i64: 1>, scalar_prefetch = 0 : i64, scratch_operands = 0 : i64, tpu.core_type = #tpu.core_type<tc>, window_params = [{transform_indices = @transform_0, window_bounds = array<i64: 8, 128>}, {pipeline_mode = #tpu.pipeline_mode<synchronous>, transform_indices = @transform_1, window_bounds = array<i64: 128, 256>}, {pipeline_mode = #tpu.pipeline_mode<synchronous>, transform_indices = @transform_2, window_bounds = array<i64: 1, 256>}, {pipeline_mode = #tpu.pipeline_mode<synchronous>, transform_indices = @transform_3, window_bounds = array<i64: 256, 512>}, {pipeline_mode = #tpu.pipeline_mode<synchronous>, transform_indices = @transform_4, window_bounds = array<i64: 1, 512>}, {pipeline_mode = #tpu.pipeline_mode<synchronous>, transform_indices = @transform_5, window_bounds = array<i64: 512, 1024>}, {pipeline_mode = #tpu.pipeline_mode<synchronous>, transform_indices = @transform_6, window_bounds = array<i64: 1, 1024>}, {pipeline_mode = #tpu.pipeline_mode<synchronous>, transform_indices = @transform_7, window_bounds = array<i64: 1024, 128>}, {pipeline_mode = #tpu.pipeline_mode<synchronous>, transform_indices = @transform_8, window_bounds = array<i64: 1, 128>}, {transform_indices = @transform_9, window_bounds = array<i64: 8, 128>}]} {
    %c0 = arith.constant 0 : index
    %c0_0 = arith.constant 0 : index
    %0 = vector.load %arg1[%c0, %c0_0] : memref<8x128xf32, #tpu.memory_space<vmem>>, vector<8x128xf32>
    %1 = arith.truncf %0 : vector<8x128xf32> to vector<8x128xbf16>
    %c0_1 = arith.constant 0 : index
    %c0_2 = arith.constant 0 : index
    %2 = vector.load %arg2[%c0_1, %c0_2] : memref<128x256xbf16, #tpu.memory_space<vmem>>, vector<128x256xbf16>
    %cst = arith.constant dense<0.000000e+00> : vector<8x256xf32>
    %3 = tpu.matmul %1, %2, %cst {dimension_numbers = #tpu.dot_dimension_numbers<[1], [0], [0], [1], [0, 0, 1, 1], [], []>} : vector<8x128xbf16>, vector<128x256xbf16>, vector<8x256xf32> -> vector<8x256xf32>
    %c0_3 = arith.constant 0 : index
    %c0_4 = arith.constant 0 : index
    %4 = vector.load %arg3[%c0_3, %c0_4] : memref<1x256xf32, #tpu.memory_space<vmem>>, vector<1x256xf32>
    %5 = vector.broadcast %4 : vector<1x256xf32> to vector<8x256xf32>
    %6 = arith.addf %3, %5 : vector<8x256xf32>
    %cst_5 = arith.constant 2.000000e-01 : f32
    %7 = vector.broadcast %cst_5 : f32 to vector<8x256xf32>
    %8 = arith.mulf %7, %6 : vector<8x256xf32>
    %9 = arith.maximumf %6, %8 : vector<8x256xf32>
    %10 = arith.truncf %9 : vector<8x256xf32> to vector<8x256xbf16>
    %c0_6 = arith.constant 0 : index
    %c0_7 = arith.constant 0 : index
    %11 = vector.load %arg4[%c0_6, %c0_7] : memref<256x512xbf16, #tpu.memory_space<vmem>>, vector<256x512xbf16>
    %cst_8 = arith.constant dense<0.000000e+00> : vector<8x512xf32>
    %12 = tpu.matmul %10, %11, %cst_8 {dimension_numbers = #tpu.dot_dimension_numbers<[1], [0], [0], [1], [0, 0, 1, 1], [], []>} : vector<8x256xbf16>, vector<256x512xbf16>, vector<8x512xf32> -> vector<8x512xf32>
    %c0_9 = arith.constant 0 : index
    %c0_10 = arith.constant 0 : index
    %13 = vector.load %arg5[%c0_9, %c0_10] : memref<1x512xf32, #tpu.memory_space<vmem>>, vector<1x512xf32>
    %14 = vector.broadcast %13 : vector<1x512xf32> to vector<8x512xf32>
    %15 = arith.addf %12, %14 : vector<8x512xf32>
    %cst_11 = arith.constant 2.000000e-01 : f32
    %16 = vector.broadcast %cst_11 : f32 to vector<8x512xf32>
    %17 = arith.mulf %16, %15 : vector<8x512xf32>
    %18 = arith.maximumf %15, %17 : vector<8x512xf32>
    %19 = arith.truncf %18 : vector<8x512xf32> to vector<8x512xbf16>
    %c0_12 = arith.constant 0 : index
    %c0_13 = arith.constant 0 : index
    %20 = vector.load %arg6[%c0_12, %c0_13] : memref<512x1024xbf16, #tpu.memory_space<vmem>>, vector<512x1024xbf16>
    %cst_14 = arith.constant dense<0.000000e+00> : vector<8x1024xf32>
    %21 = tpu.matmul %19, %20, %cst_14 {dimension_numbers = #tpu.dot_dimension_numbers<[1], [0], [0], [1], [0, 0, 1, 1], [], []>} : vector<8x512xbf16>, vector<512x1024xbf16>, vector<8x1024xf32> -> vector<8x1024xf32>
    %c0_15 = arith.constant 0 : index
    %c0_16 = arith.constant 0 : index
    %22 = vector.load %arg7[%c0_15, %c0_16] : memref<1x1024xf32, #tpu.memory_space<vmem>>, vector<1x1024xf32>
    %23 = vector.broadcast %22 : vector<1x1024xf32> to vector<8x1024xf32>
    %24 = arith.addf %21, %23 : vector<8x1024xf32>
    %cst_17 = arith.constant 2.000000e-01 : f32
    %25 = vector.broadcast %cst_17 : f32 to vector<8x1024xf32>
    %26 = arith.mulf %25, %24 : vector<8x1024xf32>
    %27 = arith.maximumf %24, %26 : vector<8x1024xf32>
    %28 = arith.truncf %27 : vector<8x1024xf32> to vector<8x1024xbf16>
    %c0_18 = arith.constant 0 : index
    %c0_19 = arith.constant 0 : index
    %29 = vector.load %arg8[%c0_18, %c0_19] : memref<1024x128xbf16, #tpu.memory_space<vmem>>, vector<1024x128xbf16>
    %cst_20 = arith.constant dense<0.000000e+00> : vector<8x128xf32>
    %30 = tpu.matmul %28, %29, %cst_20 {dimension_numbers = #tpu.dot_dimension_numbers<[1], [0], [0], [1], [0, 0, 1, 1], [], []>} : vector<8x1024xbf16>, vector<1024x128xbf16>, vector<8x128xf32> -> vector<8x128xf32>
    %c0_21 = arith.constant 0 : index
    %c0_22 = arith.constant 0 : index
    %31 = vector.load %arg9[%c0_21, %c0_22] : memref<1x128xf32, #tpu.memory_space<vmem>>, vector<1x128xf32>
    %32 = vector.broadcast %31 : vector<1x128xf32> to vector<8x128xf32>
    %33 = arith.addf %30, %32 : vector<8x128xf32>
    %34 = math.tanh %33 : vector<8x128xf32>
    %c0_23 = arith.constant 0 : index
    %c0_24 = arith.constant 0 : index
    %35 = vector.load %arg10[%c0_23, %c0_24] : memref<8x128xf32, #tpu.memory_space<vmem>>, vector<8x128xf32>
    tpu.vector_store %arg10[%c0_23, %c0_24], %34 {strides = array<i32>} : memref<8x128xf32, #tpu.memory_space<vmem>>, vector<8x128xf32>,
    return
  }
  func.func @transform_0(%arg0: i32) -> (i32, i32) {
    %c0_i32 = arith.constant 0 : i32
    %c0_i32_0 = arith.constant 0 : i32
    return %arg0, %c0_i32 : i32, i32
  }
  func.func @transform_1(%arg0: i32) -> (i32, i32) {
    %c0_i32 = arith.constant 0 : i32
    %c0_i32_0 = arith.constant 0 : i32
    %c0_i32_1 = arith.constant 0 : i32
    return %c0_i32, %c0_i32_0 : i32, i32
  }
  func.func @transform_2(%arg0: i32) -> (i32, i32) {
    %c0_i32 = arith.constant 0 : i32
    %c0_i32_0 = arith.constant 0 : i32
    %c0_i32_1 = arith.constant 0 : i32
    return %c0_i32, %c0_i32_0 : i32, i32
  }
  func.func @transform_3(%arg0: i32) -> (i32, i32) {
    %c0_i32 = arith.constant 0 : i32
    %c0_i32_0 = arith.constant 0 : i32
    %c0_i32_1 = arith.constant 0 : i32
    return %c0_i32, %c0_i32_0 : i32, i32
  }
  func.func @transform_4(%arg0: i32) -> (i32, i32) {
    %c0_i32 = arith.constant 0 : i32
    %c0_i32_0 = arith.constant 0 : i32
    %c0_i32_1 = arith.constant 0 : i32
    return %c0_i32, %c0_i32_0 : i32, i32
  }
  func.func @transform_5(%arg0: i32) -> (i32, i32) {
    %c0_i32 = arith.constant 0 : i32
    %c0_i32_0 = arith.constant 0 : i32
    %c0_i32_1 = arith.constant 0 : i32
    return %c0_i32, %c0_i32_0 : i32, i32
  }
  func.func @transform_6(%arg0: i32) -> (i32, i32) {
    %c0_i32 = arith.constant 0 : i32
    %c0_i32_0 = arith.constant 0 : i32
    %c0_i32_1 = arith.constant 0 : i32
    return %c0_i32, %c0_i32_0 : i32, i32
  }
  func.func @transform_7(%arg0: i32) -> (i32, i32) {
    %c0_i32 = arith.constant 0 : i32
    %c0_i32_0 = arith.constant 0 : i32
    %c0_i32_1 = arith.constant 0 : i32
    return %c0_i32, %c0_i32_0 : i32, i32
  }
  func.func @transform_8(%arg0: i32) -> (i32, i32) {
    %c0_i32 = arith.constant 0 : i32
    %c0_i32_0 = arith.constant 0 : i32
    %c0_i32_1 = arith.constant 0 : i32
    return %c0_i32, %c0_i32_0 : i32, i32
  }
  func.func @transform_9(%arg0: i32) -> (i32, i32) {
    %c0_i32 = arith.constant 0 : i32
    %c0_i32_0 = arith.constant 0 : i32
    return %arg0, %c0_i32 : i32, i32
  }
}

</mosaic_0001>

<bundles_post_ra>
// kernel: generator_forward.1
= control target key start
LH: loop header
LB: loop body
LE: loop exit
PB: predicated region body
PF: predicated region fallthrough
CT: control target
= control target key end

     0   :  { %14 = vsyncpa [#allocation3], 0  ;;  %s4327_s0 = inlined_call_operand.vmem [shape: f32[8,128], index: 0, kind: input, shape index: {}]   ;;  %s4328_s1 = inlined_call_operand.hbm [shape: bf16[128,256], index: 1, kind: input, shape index: {}]   ;;  %s4329_s2 = inlined_call_operand.vmem [shape: f32[1,256], index: 2, kind: input, shape index: {}]   ;;  %s4330_s3 = inlined_call_operand.hbm [shape: bf16[256,512], index: 3, kind: input, shape index: {}]   ;;  %s4331_s4 = inlined_call_operand.vmem [shape: f32[1,512], index: 4, kind: input, shape index: {}]   ;;  %s4332_s5 = inlined_call_operand.hbm [shape: bf16[512,1024], index: 5, kind: input, shape index: {}]   ;;  %s4333_s6 = inlined_call_operand.vmem [shape: f32[1,1024], index: 6, kind: input, shape index: {}]   ;;  %s4334_s7 = inlined_call_operand.hbm [shape: bf16[1024,128], index: 7, kind: input, shape index: {}]   ;;  %s4335_s8 = inlined_call_operand.vmem [shape: f32[1,128], index: 8, kind: input, shape index: {}]   ;;  %s4336_s9 = inlined_call_operand.hbm [shape: f32[8,128], index: 9, kind: output, shape index: {}]  }
   0x1   :  { %15 = vsyncpa [#allocation6], 0 }
   0x2   :  { %16 = vsyncpa [#allocation9], 0 }
   0x3   :  { %17 = vsyncpa [#allocation4], 0  ;;  %s4171_s30 = smov [#allocation5]  }
   0x4   :  { %s39_s10 = sshll.u32 %s4171_s30, 4  ;;  %s40_s10 = int_to_ptr.vmem [resolvable:$true] %s39_s10 }
   0x5   :  { %s4071_s11 = scalar_lea.vmem %s40_s10, 8192  ;;  %p4076_p1 = scmp.lt.s32.totalorder %s40_s10, %s40_s10 }
   0x6   :  { %p4072_p0 = scmp.ne.s32.totalorder %s40_s10, %s4071_s11  ;;  %p4077_p2 = scmp.lt.s32.totalorder %s4071_s11, %s4071_s11 }
   0x8   :  { %p4078_p3 = por %p4077_p2, %p4076_p1 }
   0xa   :  { %p4079_p4 = pnand %p4078_p3, %p4072_p0 }
   0xc   :  { %4082 = shalt.err (!%p4079_p4)
}
   0xd   :  { %s4172_s12 = smov 256   ;;  %s4173_s13 = smov 16  }
   0xe   :  { %45 = dma.hbm_to_vmem [thread:$0]  %s4330_s3, 8192, %s40_s10, [#allocation6], %s4172_s12, %s4172_s12, %s4173_s13  }
   0xf   :  { %s4174_s16 = smov [#allocation2]  }
  0x10   :  { %s25_s17 = sshll.u32 %s4174_s16, 4  ;;  %s26_s17 = int_to_ptr.vmem [resolvable:$true] %s25_s17 }
  0x11   :  { %s4091_s18 = scalar_lea.vmem %s26_s17, 2048  ;;  %p4096_p6 = scmp.lt.s32.totalorder %s26_s17, %s26_s17 }
  0x12   :  { %p4092_p5 = scmp.ne.s32.totalorder %s26_s17, %s4091_s18  ;;  %p4097_p7 = scmp.lt.s32.totalorder %s4091_s18, %s4091_s18 }
  0x14   :  { %p4098_p8 = por %p4097_p7, %p4096_p6 }
  0x16   :  { %p4099_p9 = pnand %p4098_p8, %p4092_p5 }
  0x18   :  { %4102 = shalt.err (!%p4099_p9)
}
  0x19   :  { %s4175_s19 = smov 128   ;;  %s4176_s20 = smov 8  }
  0x1a   :  { %31 = dma.hbm_to_vmem [thread:$0]  %s4328_s1, 2048, %s26_s17, [#allocation3], %s4175_s19, %s4175_s19, %s4176_s20  }
  0x1b   :  { %s4177_s23 = smov [#allocation7]  }
  0x1c   :  { %s53_s24 = sshll.u32 %s4177_s23, 4  ;;  %s54_s24 = int_to_ptr.vmem [resolvable:$true] %s53_s24 }
  0x1d   :  { %s4111_s3 = scalar_lea.vmem %s54_s24, 32768  ;;  %p4116_p11 = scmp.lt.s32.totalorder %s54_s24, %s54_s24 }
  0x1e   :  { %p4112_p10 = scmp.ne.s32.totalorder %s54_s24, %s4111_s3  ;;  %p4117_p12 = scmp.lt.s32.totalorder %s4111_s3, %s4111_s3 }
  0x20   :  { %p4118_p13 = por %p4117_p12, %p4116_p11 }
  0x22   :  { %p4119_p0 = pnand %p4118_p13, %p4112_p10 }
  0x24   :  { %4122 = shalt.err (!%p4119_p0)
}
  0x25   :  { %s4178_s25 = smov 512   ;;  %s4179_s26 = smov 32  }
  0x26   :  { %59 = dma.hbm_to_vmem [thread:$0]  %s4332_s5, 32768, %s54_s24, [#allocation6], %s4178_s25, %s4178_s25, %s4179_s26  }
  0x27   :  { %s4180_s29 = smov [#allocation8]  }
  0x28   :  { %s67_s30 = sshll.u32 %s4180_s29, 4  ;;  %s68_s30 = int_to_ptr.vmem [resolvable:$true] %s67_s30 }
  0x29   :  { %s4131_s1 = scalar_lea.vmem %s68_s30, 8192  ;;  %p4136_p2 = scmp.lt.s32.totalorder %s68_s30, %s68_s30 }
  0x2a   :  { %p4132_p1 = scmp.ne.s32.totalorder %s68_s30, %s4131_s1  ;;  %p4137_p3 = scmp.lt.s32.totalorder %s4131_s1, %s4131_s1 }
  0x2c   :  { %p4138_p4 = por %p4137_p3, %p4136_p2 }
  0x2e   :  { %p4139_p5 = pnand %p4138_p4, %p4132_p1 }
  0x30   :  { %4142 = shalt.err (!%p4139_p5)
}
  0x31   :  { %s4181_s10 = smov 64   ;;  %s4182_s11 = smov 4  }
  0x32   :  { %73 = dma.hbm_to_vmem [thread:$0]  %s4334_s7, 8192, %s68_s30, [#allocation9], %s4181_s10, %s4181_s10, %s4182_s11  }
  0x33   :  { %4163 = dma.done.wait [#allocation3], 2048  }
  0x34   :  { %4164 = vsyncadd [#allocation3], 4294965248 }
  0x35   :  { %4165 = dma.done.wait [#allocation6], 40960  }
  0x36   :  { %4166 = vsyncadd [#allocation6], 4294926336 }
  0x37   :  { %4167 = dma.done.wait [#allocation9], 8192  }
  0x38   :  { %4168 = vsyncadd [#allocation9], 4294959104  ;;  %v4183_v0 = vmov 0   ;;  %v3877_v1 = vld [vmem:[#allocation2 + $0x74] ss:$8 sps:$4 sm:$0xff]   ;;  %v89_v26 = vld [vmem:[%s4327_s0] sm:$0xff] }
  0x39   :  { %231 = vmatprep.mubr.bf16.mxu0 %v4183_v0  ;;  %v3879_v2 = vld [vmem:[#allocation2 + $0x70] ss:$8 sps:$4 sm:$0xff]   ;;  %199 = vmatprep.subr.bf16.mxu0 %v3877_v1  ;;  %v3880_v3 = vld [vmem:[#allocation2 + $0x64] ss:$8 sps:$4 sm:$0xff]   ;;  %v3882_v4 = vld [vmem:[#allocation2 + $0x60] ss:$8 sps:$4 sm:$0xff]   ;;  %v90_v30 = vpack.c.bf16 %v89_v26, %v89_v26 }
  0x3a   :  { %200 = vmatpush1.bf16.msra.mxu0 %v3879_v2  ;;  %v3883_v5 = vld [vmem:[#allocation2 + $0x54] ss:$8 sps:$4 sm:$0xff]   ;;  %v3885_v6 = vld [vmem:[#allocation2 + $0x50] ss:$8 sps:$4 sm:$0xff]   ;;  %v3886_v7 = vld [vmem:[#allocation2 + $0x44] ss:$8 sps:$4 sm:$0xff]  }
  0x3b   :  { %201 = vmatprep.subr.bf16.mxu0 %v3880_v3  ;;  %v3888_v8 = vld [vmem:[#allocation2 + $0x40] ss:$8 sps:$4 sm:$0xff]   ;;  %v3901_v9 = vld [vmem:[#allocation5 + $0xe4] ss:$16 sps:$4 sm:$0xff]   ;;  %v3891_v13 = vld [vmem:[#allocation2 + $0x30] ss:$8 sps:$4 sm:$0xff]  }
  0x3c   :  { %v3889_v10 = vld [vmem:[#allocation2 + $0x34] ss:$8 sps:$4 sm:$0xff]   ;;  %652 = vmatprep.subr.bf16.mxu1 %v3901_v9  ;;  %v3906_v11 = vld [vmem:[#allocation5 + $0xe0] ss:$16 sps:$4 sm:$0xff]   ;;  %v3892_v14 = vld [vmem:[#allocation2 + $0x24] ss:$8 sps:$4 sm:$0xff]  }
  0x3d   :  { %v3907_v12 = vld [vmem:[#allocation5 + $0xc4] ss:$16 sps:$4 sm:$0xff]   ;;  %653 = vmatpush1.bf16.msra.mxu1 %v3906_v11  ;;  %v3912_v15 = vld [vmem:[#allocation5 + $0xc0] ss:$16 sps:$4 sm:$0xff]   ;;  %v3905_v27 = vld [vmem:[#allocation5 + $0xec] ss:$16 sps:$4 sm:$0xff]  }
  0x3e   :  { %202 = vmatpush1.bf16.msra.mxu0 %v3882_v4  ;;  %654 = vmatprep.subr.bf16.mxu1 %v3907_v12  ;;  %v3913_v16 = vld [vmem:[#allocation5 + $0xa4] ss:$16 sps:$4 sm:$0xff]   ;;  %v3894_v17 = vld [vmem:[#allocation2 + $0x20] ss:$8 sps:$4 sm:$0xff]   ;;  %v3897_v21 = vld [vmem:[#allocation2 + $0x10] ss:$8 sps:$4 sm:$0xff]  }
  0x3f   :  { %203 = vmatprep.subr.bf16.mxu0 %v3883_v5  ;;  %v3895_v18 = vld [vmem:[#allocation2 + $0x14] ss:$8 sps:$4 sm:$0xff]   ;;  %v3918_v19 = vld [vmem:[#allocation5 + $0xa0] ss:$16 sps:$4 sm:$0xff]   ;;  %v3898_v22 = vld [vmem:[#allocation2 + $0x4] ss:$8 sps:$4 sm:$0xff]  }
  0x40   :  { %v3919_v20 = vld [vmem:[#allocation5 + $0x84] ss:$16 sps:$4 sm:$0xff]   ;;  %v3924_v23 = vld [vmem:[#allocation5 + $0x80] ss:$16 sps:$4 sm:$0xff]   ;;  %v3903_v31 = vld [vmem:[#allocation5 + $0xe8] ss:$16 sps:$4 sm:$0xff]  }
  0x41   :  { %655 = vmatpush1.bf16.msra.mxu1 %v3912_v15  ;;  %v3925_v24 = vld [vmem:[#allocation5 + $0x64] ss:$16 sps:$4 sm:$0xff]   ;;  %v3900_v25 = vld [vmem:[#allocation2] ss:$8 sps:$4 sm:$0xff]   ;;  %v3911_v32 = vld [vmem:[#allocation5 + $0xcc] ss:$16 sps:$4 sm:$0xff]  }
  0x42   :  { %204 = vmatpush1.bf16.msra.mxu0 %v3885_v6  ;;  %656 = vmatprep.subr.bf16.mxu1 %v3913_v16  ;;  %v3930_v28 = vld [vmem:[#allocation5 + $0x60] ss:$16 sps:$4 sm:$0xff]   ;;  %v3931_v29 = vld [vmem:[#allocation5 + $0x44] ss:$16 sps:$4 sm:$0xff]   ;;  %v3909_v35 = vld [vmem:[#allocation5 + $0xc8] ss:$16 sps:$4 sm:$0xff]  }
  0x43   :  { %205 = vmatprep.subr.bf16.mxu0 %v3886_v7  ;;  %v3936_v33 = vld [vmem:[#allocation5 + $0x40] ss:$16 sps:$4 sm:$0xff]   ;;  %v3937_v34 = vld [vmem:[#allocation5 + $0x24] ss:$16 sps:$4 sm:$0xff]   ;;  %v3917_v36 = vld [vmem:[#allocation5 + $0xac] ss:$16 sps:$4 sm:$0xff]  }
  0x44   :  { %v3942_v37 = vld [vmem:[#allocation5 + $0x20] ss:$16 sps:$4 sm:$0xff]   ;;  %v3943_v38 = vld [vmem:[#allocation5 + $0x4] ss:$16 sps:$4 sm:$0xff]   ;;  %v3915_v39 = vld [vmem:[#allocation5 + $0xa8] ss:$16 sps:$4 sm:$0xff]  }
  0x45   :  { %657 = vmatpush1.bf16.msra.mxu1 %v3918_v19  ;;  %v3923_v40 = vld [vmem:[#allocation5 + $0x8c] ss:$16 sps:$4 sm:$0xff]   ;;  %v3948_v41 = vld [vmem:[#allocation5] ss:$16 sps:$4 sm:$0xff]   ;;  %v3949_v42 = vld [vmem:[#allocation5 + $0x1e4] ss:$16 sps:$4 sm:$0xff]  }
  0x46   :  { %206 = vmatpush1.bf16.msra.mxu0 %v3888_v8  ;;  %658 = vmatprep.subr.bf16.mxu1 %v3919_v20  ;;  %v3921_v43 = vld [vmem:[#allocation5 + $0x88] ss:$16 sps:$4 sm:$0xff]   ;;  %v3929_v44 = vld [vmem:[#allocation5 + $0x6c] ss:$16 sps:$4 sm:$0xff]   ;;  %v3954_v45 = vld [vmem:[#allocation5 + $0x1e0] ss:$16 sps:$4 sm:$0xff]  }
  0x47   :  { %207 = vmatprep.subr.bf16.mxu0 %v3889_v10  ;;  %v3955_v46 = vld [vmem:[#allocation5 + $0x1c4] ss:$16 sps:$4 sm:$0xff]   ;;  %v3927_v47 = vld [vmem:[#allocation5 + $0x68] ss:$16 sps:$4 sm:$0xff]   ;;  %v3960_v48 = vld [vmem:[#allocation5 + $0x1c0] ss:$16 sps:$4 sm:$0xff]  }
  0x48   :  { %v3935_v49 = vld [vmem:[#allocation5 + $0x4c] ss:$16 sps:$4 sm:$0xff]   ;;  %v3961_v50 = vld [vmem:[#allocation5 + $0x1a4] ss:$16 sps:$4 sm:$0xff]   ;;  %v3933_v51 = vld [vmem:[#allocation5 + $0x48] ss:$16 sps:$4 sm:$0xff]  }
  0x49   :  { %659 = vmatpush1.bf16.msra.mxu1 %v3924_v23  ;;  %v3966_v52 = vld [vmem:[#allocation5 + $0x1a0] ss:$16 sps:$4 sm:$0xff]   ;;  %v3941_v53 = vld [vmem:[#allocation5 + $0x2c] ss:$16 sps:$4 sm:$0xff]   ;;  %v3967_v54 = vld [vmem:[#allocation5 + $0x184] ss:$16 sps:$4 sm:$0xff]  }
  0x4a   :  { %208 = vmatpush1.bf16.msra.mxu0 %v3891_v13  ;;  %660 = vmatprep.subr.bf16.mxu1 %v3925_v24  ;;  %v3939_v55 = vld [vmem:[#allocation5 + $0x28] ss:$16 sps:$4 sm:$0xff]   ;;  %v3972_v56 = vld [vmem:[#allocation5 + $0x180] ss:$16 sps:$4 sm:$0xff]   ;;  %v3947_v57 = vld [vmem:[#allocation5 + $0xc] ss:$16 sps:$4 sm:$0xff]  }
  0x4b   :  { %209 = vmatprep.subr.bf16.mxu0 %v3892_v14  ;;  %v3973_v58 = vld [vmem:[#allocation5 + $0x164] ss:$16 sps:$4 sm:$0xff]   ;;  %v3945_v59 = vld [vmem:[#allocation5 + $0x8] ss:$16 sps:$4 sm:$0xff]   ;;  %v3978_v60 = vld [vmem:[#allocation5 + $0x160] ss:$16 sps:$4 sm:$0xff]  }
  0x4c   :  { %v3953_v61 = vld [vmem:[#allocation5 + $0x1ec] ss:$16 sps:$4 sm:$0xff]   ;;  %v3951_v62 = vld [vmem:[#allocation5 + $0x1e8] ss:$16 sps:$4 sm:$0xff]   ;;  %v3979_v7 = vld [vmem:[#allocation5 + $0x144] ss:$16 sps:$4 sm:$0xff]  }
  0x4d   :  { %661 = vmatpush1.bf16.msra.mxu1 %v3930_v28  ;;  %v3959_v63 = vld [vmem:[#allocation5 + $0x1cc] ss:$16 sps:$4 sm:$0xff]   ;;  %v3957_v0 = vld [vmem:[#allocation5 + $0x1c8] ss:$16 sps:$4 sm:$0xff]   ;;  %v3984_v10 = vld [vmem:[#allocation5 + $0x140] ss:$16 sps:$4 sm:$0xff]  }
  0x4e   :  { %210 = vmatpush1.bf16.msra.mxu0 %v3894_v17  ;;  %662 = vmatprep.subr.bf16.mxu1 %v3931_v29  ;;  %v3965_v1 = vld [vmem:[#allocation5 + $0x1ac] ss:$16 sps:$4 sm:$0xff]   ;;  %v3963_v2 = vld [vmem:[#allocation5 + $0x1a8] ss:$16 sps:$4 sm:$0xff]   ;;  %v3985_v11 = vld [vmem:[#allocation5 + $0x124] ss:$16 sps:$4 sm:$0xff]  }
  0x4f   :  { %211 = vmatprep.subr.bf16.mxu0 %v3895_v18  ;;  %v3971_v3 = vld [vmem:[#allocation5 + $0x18c] ss:$16 sps:$4 sm:$0xff]   ;;  %v3969_v4 = vld [vmem:[#allocation5 + $0x188] ss:$16 sps:$4 sm:$0xff]   ;;  %v3990_v14 = vld [vmem:[#allocation5 + $0x120] ss:$16 sps:$4 sm:$0xff]  }
  0x50   :  { %v3977_v5 = vld [vmem:[#allocation5 + $0x16c] ss:$16 sps:$4 sm:$0xff]   ;;  %v3975_v6 = vld [vmem:[#allocation5 + $0x168] ss:$16 sps:$4 sm:$0xff]   ;;  %v3991_v15 = vld [vmem:[#allocation5 + $0x104] ss:$16 sps:$4 sm:$0xff]  }
  0x51   :  { %663 = vmatpush1.bf16.msra.mxu1 %v3936_v33  ;;  %v3983_v8 = vld [vmem:[#allocation5 + $0x14c] ss:$16 sps:$4 sm:$0xff]   ;;  %v3981_v9 = vld [vmem:[#allocation5 + $0x148] ss:$16 sps:$4 sm:$0xff]   ;;  %v3996_v18 = vld [vmem:[#allocation5 + $0x100] ss:$16 sps:$4 sm:$0xff]  }
  0x52   :  { %212 = vmatpush1.bf16.msra.mxu0 %v3897_v21  ;;  %664 = vmatprep.subr.bf16.mxu1 %v3937_v34  ;;  %v3989_v12 = vld [vmem:[#allocation5 + $0x12c] ss:$16 sps:$4 sm:$0xff]   ;;  %v3987_v13 = vld [vmem:[#allocation5 + $0x128] ss:$16 sps:$4 sm:$0xff]   ;;  %v802_v19 = vld [vmem:[#allocation7 + $0x1c0] sm:$0xff] }
  0x53   :  { %213 = vmatprep.subr.bf16.mxu0 %v3898_v22  ;;  %v3995_v16 = vld [vmem:[#allocation5 + $0x10c] ss:$16 sps:$4 sm:$0xff]   ;;  %v3993_v17 = vld [vmem:[#allocation5 + $0x108] ss:$16 sps:$4 sm:$0xff]   ;;  %v806_v20 = vld [vmem:[#allocation7 + $0x1e0] sm:$0xff] }
  0x54   :  { %v930_v21 = vld [vmem:[#allocation7 + $0x5c0] sm:$0xff]  ;;  %v3510_v22 = vcombine.low %v802_v19, %v806_v20  ;;  %v3511_v23 = vcombine.high %v802_v19, %v806_v20 }
  0x55   :  { %665 = vmatpush1.bf16.msra.mxu1 %v3942_v37  ;;  %v934_v24 = vld [vmem:[#allocation7 + $0x5e0] sm:$0xff] }
  0x56   :  { %214 = vmatpush1.bf16.msra.mxu0 %v3900_v25  ;;  %666 = vmatprep.subr.bf16.mxu1 %v3943_v38  ;;  %v3638_v25 = vcombine.low %v930_v21, %v934_v24  ;;  %v3639_v26 = vcombine.high %v930_v21, %v934_v24  ;;  %v754_v20 = vld [vmem:[#allocation7 + $0x40] sm:$0xff] }
  0x57   :  { %693 = vmatprep.subr.bf16.mxu0 %v3905_v27  ;;  %v109_v27 = vlaneseq  ;;  %v758_v21 = vld [vmem:[#allocation7 + $0x60] sm:$0xff] }
  0x59   :  { %232 = vmatmul.mubr.bf16.vlgmr.msra.gmra.mxu0 %v90_v30  ;;  %667 = vmatpush1.bf16.msra.mxu1 %v3948_v41  ;;  %v4250_v28 = vshrl.u32 %v109_v27, 7  ;;  %v107_v30 = vld [vmem:[%s4329_s2] sm:$0x3] }
  0x5a   :  { %694 = vmatpush1.bf16.msra.mxu0 %v3903_v31  ;;  %668 = vmatprep.subr.bf16.mxu1 %v3949_v42 }
  0x5b   :  { %695 = vmatprep.subr.bf16.mxu0 %v3911_v32  ;;  %v4253_v29 = vsub.s32 0, %v4250_v28  ;;  %v4259_v31 = vsub.s32 1, %v4250_v28 }
  0x5d   :  { %669 = vmatpush2.bf16.msra.mxu1 %v3954_v45  ;;  %v112_v32 = vrot.slane %v107_v30, %v4253_v29  ;;  %v116_v33 = vrot.slane %v107_v30, %v4259_v31  ;;  %v798_v45 = vld [vmem:[#allocation7 + $0x1a0] sm:$0xff] }
  0x5e   :  { %696 = vmatpush1.bf16.msra.mxu0 %v3909_v35  ;;  %670 = vmatprep.subr.bf16.mxu1 %v3955_v46  ;;  %v922_v46 = vld [vmem:[#allocation7 + $0x580] sm:$0xff] }
  0x5f   :  { %697 = vmatprep.subr.bf16.mxu0 %v3917_v36  ;;  %v746_v30 = vld [vmem:[#allocation7] sm:$0xff] }
  0x61   :  { %671 = vmatpush2.bf16.msra.mxu1 %v3960_v48 }
  0x62   :  { %698 = vmatpush1.bf16.msra.mxu0 %v3915_v39  ;;  %672 = vmatprep.subr.bf16.mxu1 %v3961_v50 }
  0x63   :  { %699 = vmatprep.subr.bf16.mxu0 %v3923_v40 }
  0x65   :  { %673 = vmatpush2.bf16.msra.mxu1 %v3966_v52  ;;  %v786_v52 = vld [vmem:[#allocation7 + $0x140] sm:$0xff] }
  0x66   :  { %700 = vmatpush1.bf16.msra.mxu0 %v3921_v43  ;;  %674 = vmatprep.subr.bf16.mxu1 %v3967_v54  ;;  %v794_v43 = vld [vmem:[#allocation7 + $0x180] sm:$0xff] }
  0x67   :  { %701 = vmatprep.subr.bf16.mxu0 %v3929_v44  ;;  %v3503_v50 = vcombine.high %v794_v43, %v798_v45  ;;  %v914_v54 = vld [vmem:[#allocation7 + $0x540] sm:$0xff] }
  0x69   :  { %675 = vmatpush2.bf16.msra.mxu1 %v3972_v56  ;;  %v3502_v56 = vcombine.low %v794_v43, %v798_v45 }
  0x6a   :  { %702 = vmatpush1.bf16.msra.mxu0 %v3927_v47  ;;  %676 = vmatprep.subr.bf16.mxu1 %v3973_v58  ;;  %v926_v47 = vld [vmem:[#allocation7 + $0x5a0] sm:$0xff] }
  0x6b   :  { %703 = vmatprep.subr.bf16.mxu0 %v3935_v49 }
  0x6d   :  { %677 = vmatpush2.bf16.msra.mxu1 %v3978_v60  ;;  %v778_v60 = vld [vmem:[#allocation7 + $0x100] sm:$0xff] }
  0x6e   :  { %704 = vmatpush1.bf16.msra.mxu0 %v3933_v51  ;;  %678 = vmatprep.subr.bf16.mxu1 %v3979_v7  ;;  %v3631_v51 = vcombine.high %v922_v46, %v926_v47  ;;  %v902_v7 = vld [vmem:[#allocation7 + $0x4e0] sm:$0xff] }
  0x6f   :  { %705 = vmatprep.subr.bf16.mxu0 %v3941_v53  ;;  %v790_v53 = vld [vmem:[#allocation7 + $0x160] sm:$0xff] }
  0x70   :  { %v3495_v58 = vcombine.high %v786_v52, %v790_v53 }
  0x71   :  { %679 = vmatpush2.bf16.msra.mxu1 %v3984_v10 }
  0x72   :  { %706 = vmatpush1.bf16.msra.mxu0 %v3939_v55  ;;  %680 = vmatprep.subr.bf16.mxu1 %v3985_v11  ;;  %v918_v55 = vld [vmem:[#allocation7 + $0x560] sm:$0xff] }
  0x73   :  { %707 = vmatprep.subr.bf16.mxu0 %v3947_v57  ;;  %v3630_v57 = vcombine.low %v922_v46, %v926_v47  ;;  %v858_v47 = vld [vmem:[#allocation7 + $0x380] sm:$0xff] }
  0x75   :  { %681 = vmatpush2.bf16.msra.mxu1 %v3990_v14  ;;  %v890_v14 = vld [vmem:[#allocation7 + $0x480] sm:$0xff] }
  0x76   :  { %708 = vmatpush1.bf16.msra.mxu0 %v3945_v59  ;;  %682 = vmatprep.subr.bf16.mxu1 %v3991_v15  ;;  %v3623_v59 = vcombine.high %v914_v54, %v918_v55  ;;  %v894_v15 = vld [vmem:[#allocation7 + $0x4a0] sm:$0xff] }
  0x77   :  { %709 = vmatprep.subr.bf16.mxu0 %v3953_v61  ;;  %v782_v61 = vld [vmem:[#allocation7 + $0x120] sm:$0xff]  ;;  %v3599_v19 = vcombine.high %v890_v14, %v894_v15 }
  0x79   :  { %683 = vmatpush2.bf16.msra.mxu1 %v3996_v18 }
  0x7a   :  { %710 = vmatpush2.bf16.msra.mxu0 %v3951_v62  ;;  %2324 = vmatprep.subr.bf16.mxu1 %v3511_v23  ;;  %v906_v62 = vld [vmem:[#allocation7 + $0x500] sm:$0xff] }
  0x7b   :  { %711 = vmatprep.subr.bf16.mxu0 %v3959_v63  ;;  %v910_v63 = vld [vmem:[#allocation7 + $0x520] sm:$0xff] }
  0x7c   :  { %v886_v23 = vld [vmem:[#allocation7 + $0x460] sm:$0xff] }
  0x7e   :  { %712 = vmatpush2.bf16.msra.mxu0 %v3957_v0  ;;  %v3494_v0 = vcombine.low %v786_v52, %v790_v53 }
  0x7f   :  { %713 = vmatprep.subr.bf16.mxu0 %v3965_v1  ;;  %v3622_v1 = vcombine.low %v914_v54, %v918_v55  ;;  %v850_v55 = vld [vmem:[#allocation7 + $0x340] sm:$0xff] }
  0x82   :  { %714 = vmatpush2.bf16.msra.mxu0 %v3963_v2  ;;  %v3487_v2 = vcombine.high %v778_v60, %v782_v61 }
  0x83   :  { %715 = vmatprep.subr.bf16.mxu0 %v3971_v3  ;;  %v3615_v3 = vcombine.high %v906_v62, %v910_v63 }
  0x86   :  { %716 = vmatpush2.bf16.msra.mxu0 %v3969_v4  ;;  %v770_v4 = vld [vmem:[#allocation7 + $0xc0] sm:$0xff] }
  0x87   :  { %717 = vmatprep.subr.bf16.mxu0 %v3977_v5  ;;  %v774_v5 = vld [vmem:[#allocation7 + $0xe0] sm:$0xff] }
  0x88   :  { %v3479_v10 = vcombine.high %v770_v4, %v774_v5 }
  0x8a   :  { %718 = vmatpush2.bf16.msra.mxu0 %v3975_v6  ;;  %v898_v6 = vld [vmem:[#allocation7 + $0x4c0] sm:$0xff] }
  0x8b   :  { %719 = vmatprep.subr.bf16.mxu0 %v3983_v8  ;;  %v3486_v8 = vcombine.low %v778_v60, %v782_v61  ;;  %v3607_v11 = vcombine.high %v898_v6, %v902_v7 }
  0x8e   :  { %720 = vmatpush2.bf16.msra.mxu0 %v3981_v9  ;;  %v3614_v9 = vcombine.low %v906_v62, %v910_v63  ;;  %v842_v63 = vld [vmem:[#allocation7 + $0x300] sm:$0xff] }
  0x8f   :  { %721 = vmatprep.subr.bf16.mxu0 %v3989_v12  ;;  %v762_v12 = vld [vmem:[#allocation7 + $0x80] sm:$0xff] }
  0x92   :  { %722 = vmatpush2.bf16.msra.mxu0 %v3987_v13  ;;  %v766_v13 = vld [vmem:[#allocation7 + $0xa0] sm:$0xff] }
  0x93   :  { %723 = vmatprep.subr.bf16.mxu0 %v3995_v16  ;;  %v3478_v16 = vcombine.low %v770_v4, %v774_v5  ;;  %v3471_v18 = vcombine.high %v762_v12, %v766_v13  ;;  %v3470_v24 = vcombine.low %v762_v12, %v766_v13 }
  0x96   :  { %724 = vmatpush2.bf16.msra.mxu0 %v3993_v17  ;;  %v3606_v17 = vcombine.low %v898_v6, %v902_v7  ;;  %v834_v7 = vld [vmem:[#allocation7 + $0x2c0] sm:$0xff] }
  0x97   :  { %2365 = vmatprep.subr.bf16.mxu0 %v3639_v26  ;;  %v3463_v26 = vcombine.high %v754_v20, %v758_v21 }
 0x119   :  { %v233_v34 = vpop.f32.mrf.mxu0 }
 0x11a   :  { %v234_v35 = vadd.f32 %v233_v34, %v112_v32  ;;  %v750_v32 = vld [vmem:[#allocation7 + $0x20] sm:$0xff] }
 0x11b   :  { %v235_v36 = vpop.f32.mrf.mxu0  ;;  %v878_v34 = vld [vmem:[#allocation7 + $0x420] sm:$0xff]  ;;  %v3454_v43 = vcombine.low %v746_v30, %v750_v32 }
 0x11c   :  { %v240_v37 = vmul.f32 0.2, %v234_v35  ;;  %v236_v38 = vadd.f32 %v235_v36, %v116_v33  ;;  %v874_v33 = vld [vmem:[#allocation7 + $0x400] sm:$0xff] }
 0x11d   :  { %v237_v39 = vpop.f32.mrf.mxu0 }
 0x11e   :  { %v241_v40 = vmul.f32 0.2, %v236_v38  ;;  %v242_v41 = vmax.f32 %v234_v35, %v240_v37  ;;  %v3462_v35 = vcombine.low %v754_v20, %v758_v21  ;;  %v3455_v37 = vcombine.high %v746_v30, %v750_v32  ;;  %v866_v39 = vld [vmem:[#allocation7 + $0x3c0] sm:$0xff] }
 0x11f   :  { %v238_v42 = vpop.f32.mrf.mxu0  ;;  %v950_v32 = vld [vmem:[#allocation7 + $0x660] sm:$0xff] }
 0x120   :  { %v243_v44 = vmax.f32 %v236_v38, %v241_v40  ;;  %v244_v49 = vpack.c.bf16 %v242_v41, %v242_v41  ;;  %v3583_v38 = vcombine.high %v874_v33, %v878_v34  ;;  %v870_v40 = vld [vmem:[#allocation7 + $0x3e0] sm:$0xff] }
 0x121   :  { %v994_v41 = vld [vmem:[#allocation7 + $0x7c0] sm:$0xff]  ;;  %v3575_v45 = vcombine.high %v866_v39, %v870_v40 }
 0x122   :  { %v245_v48 = vpack.c.bf16 %v243_v44, %v243_v44  ;;  %v998_v42 = vld [vmem:[#allocation7 + $0x7e0] sm:$0xff]  ;;  %v3582_v44 = vcombine.low %v874_v33, %v878_v34 }
 0x123   :  { %v3703_v46 = vcombine.high %v994_v41, %v998_v42  ;;  %v3702_v52 = vcombine.low %v994_v41, %v998_v42 }
 0x124   :  { %684 = vmatprep.mubr.bf16.mxu1 %v245_v48  ;;  %725 = vmatprep.mubr.bf16.mxu0 %v245_v48  ;;  %v862_v48 = vld [vmem:[#allocation7 + $0x3a0] sm:$0xff] }
 0x125   :  { %685 = vmatmul.mubr.bf16.vlgmr.msra.gmra.mxu1 %v244_v49  ;;  %726 = vmatmul.mubr.bf16.vlgmr.msra.gmra.mxu0 %v244_v49  ;;  %v986_v49 = vld [vmem:[#allocation7 + $0x780] sm:$0xff]  ;;  %v3567_v53 = vcombine.high %v858_v47, %v862_v48 }
 0x126   :  { %2325 = vmatpush1.bf16.msra.mxu1 %v3510_v22  ;;  %2366 = vmatpush1.bf16.msra.mxu0 %v3638_v25  ;;  %v882_v22 = vld [vmem:[#allocation7 + $0x440] sm:$0xff]  ;;  %v3598_v25 = vcombine.low %v890_v14, %v894_v15 }
 0x127   :  { %2326 = vmatprep.subr.bf16.mxu1 %v3503_v50  ;;  %2367 = vmatprep.subr.bf16.mxu0 %v3631_v51  ;;  %v3591_v27 = vcombine.high %v882_v22, %v886_v23  ;;  %v3590_v36 = vcombine.low %v882_v22, %v886_v23  ;;  %v990_v50 = vld [vmem:[#allocation7 + $0x7a0] sm:$0xff]  ;;  %v3574_v51 = vcombine.low %v866_v39, %v870_v40 }
 0x128   :  { %v3695_v54 = vcombine.high %v986_v49, %v990_v50  ;;  %v3694_v60 = vcombine.low %v986_v49, %v990_v50  ;;  %v826_v15 = vld [vmem:[#allocation7 + $0x280] sm:$0xff] }
 0x129   :  { %v942_v40 = vld [vmem:[#allocation7 + $0x620] sm:$0xff] }
 0x12a   :  { %2327 = vmatpush1.bf16.msra.mxu1 %v3502_v56  ;;  %2368 = vmatpush1.bf16.msra.mxu0 %v3630_v57  ;;  %v854_v56 = vld [vmem:[#allocation7 + $0x360] sm:$0xff] }
 0x12b   :  { %2328 = vmatprep.subr.bf16.mxu1 %v3495_v58  ;;  %2369 = vmatprep.subr.bf16.mxu0 %v3623_v59  ;;  %v978_v57 = vld [vmem:[#allocation7 + $0x740] sm:$0xff]  ;;  %v3566_v59 = vcombine.low %v858_v47, %v862_v48  ;;  %v3559_v61 = vcombine.high %v850_v55, %v854_v56  ;;  %v935_v48 = vld [vmem:[#allocation7 + $0x5e8] sm:$0xff] }
 0x12c   :  { %v982_v58 = vld [vmem:[#allocation7 + $0x760] sm:$0xff] }
 0x12d   :  { %v3687_v62 = vcombine.high %v978_v57, %v982_v58  ;;  %v3686_v4 = vcombine.low %v978_v57, %v982_v58 }
 0x12e   :  { %2329 = vmatpush1.bf16.msra.mxu1 %v3494_v0  ;;  %2370 = vmatpush1.bf16.msra.mxu0 %v3622_v1  ;;  %v846_v0 = vld [vmem:[#allocation7 + $0x320] sm:$0xff] }
 0x12f   :  { %2330 = vmatprep.subr.bf16.mxu1 %v3487_v2  ;;  %2371 = vmatprep.subr.bf16.mxu0 %v3615_v3  ;;  %v970_v1 = vld [vmem:[#allocation7 + $0x700] sm:$0xff]  ;;  %v3558_v3 = vcombine.low %v850_v55, %v854_v56  ;;  %v3551_v5 = vcombine.high %v842_v63, %v846_v0 }
 0x130   :  { %v974_v2 = vld [vmem:[#allocation7 + $0x720] sm:$0xff] }
 0x131   :  { %v3679_v6 = vcombine.high %v970_v1, %v974_v2  ;;  %v3678_v12 = vcombine.low %v970_v1, %v974_v2 }
 0x132   :  { %2331 = vmatpush1.bf16.msra.mxu1 %v3486_v8  ;;  %2372 = vmatpush1.bf16.msra.mxu0 %v3614_v9  ;;  %v838_v8 = vld [vmem:[#allocation7 + $0x2e0] sm:$0xff] }
 0x133   :  { %2332 = vmatprep.subr.bf16.mxu1 %v3479_v10  ;;  %2373 = vmatprep.subr.bf16.mxu0 %v3607_v11  ;;  %v962_v9 = vld [vmem:[#allocation7 + $0x6c0] sm:$0xff]  ;;  %v3550_v11 = vcombine.low %v842_v63, %v846_v0  ;;  %v3543_v13 = vcombine.high %v834_v7, %v838_v8 }
 0x134   :  { %v966_v10 = vld [vmem:[#allocation7 + $0x6e0] sm:$0xff] }
 0x135   :  { %v3671_v14 = vcombine.high %v962_v9, %v966_v10  ;;  %v3670_v20 = vcombine.low %v962_v9, %v966_v10 }
 0x136   :  { %2333 = vmatpush1.bf16.msra.mxu1 %v3478_v16  ;;  %2374 = vmatpush1.bf16.msra.mxu0 %v3606_v17  ;;  %v830_v16 = vld [vmem:[#allocation7 + $0x2a0] sm:$0xff] }
 0x137   :  { %2334 = vmatprep.subr.bf16.mxu1 %v3471_v18  ;;  %2375 = vmatprep.subr.bf16.mxu0 %v3599_v19  ;;  %v954_v17 = vld [vmem:[#allocation7 + $0x680] sm:$0xff]  ;;  %v3542_v19 = vcombine.low %v834_v7, %v838_v8  ;;  %v3535_v21 = vcombine.high %v826_v15, %v830_v16  ;;  %v3534_v23 = vcombine.low %v826_v15, %v830_v16  ;;  %v795_v15 = vld [vmem:[#allocation7 + $0x188] sm:$0xff] }
 0x138   :  { %v958_v18 = vld [vmem:[#allocation7 + $0x6a0] sm:$0xff]  ;;  %v799_v16 = vld [vmem:[#allocation7 + $0x1a8] sm:$0xff] }
 0x139   :  { %v3663_v22 = vcombine.high %v954_v17, %v958_v18 }
 0x13a   :  { %2335 = vmatpush1.bf16.msra.mxu1 %v3470_v24  ;;  %2376 = vmatpush1.bf16.msra.mxu0 %v3598_v25  ;;  %v3662_v24 = vcombine.low %v954_v17, %v958_v18  ;;  %v818_v25 = vld [vmem:[#allocation7 + $0x240] sm:$0xff]  ;;  %v923_v17 = vld [vmem:[#allocation7 + $0x588] sm:$0xff] }
 0x13b   :  { %2336 = vmatprep.subr.bf16.mxu1 %v3463_v26  ;;  %2377 = vmatprep.subr.bf16.mxu0 %v3591_v27  ;;  %v822_v26 = vld [vmem:[#allocation7 + $0x260] sm:$0xff]  ;;  %v927_v18 = vld [vmem:[#allocation7 + $0x5a8] sm:$0xff] }
 0x13c   :  { %v946_v27 = vld [vmem:[#allocation7 + $0x640] sm:$0xff]  ;;  %v3527_v30 = vcombine.high %v818_v25, %v822_v26  ;;  %v3526_v33 = vcombine.low %v818_v25, %v822_v26  ;;  %v3633_v25 = vcombine.high %v923_v17, %v927_v18  ;;  %v791_v26 = vld [vmem:[#allocation7 + $0x168] sm:$0xff] }
 0x13d   :  { %v3654_v34 = vcombine.low %v946_v27, %v950_v32 }
 0x13e   :  { %2337 = vmatpush1.bf16.msra.mxu1 %v3462_v35  ;;  %2378 = vmatpush1.bf16.msra.mxu0 %v3590_v36  ;;  %v3655_v35 = vcombine.high %v946_v27, %v950_v32  ;;  %v810_v36 = vld [vmem:[#allocation7 + $0x200] sm:$0xff]  ;;  %v915_v27 = vld [vmem:[#allocation7 + $0x548] sm:$0xff]  ;;  %v3504_v32 = vcombine.low %v795_v15, %v799_v16 }
 0x13f   :  { %2338 = vmatprep.subr.bf16.mxu1 %v3455_v37  ;;  %2379 = vmatprep.subr.bf16.mxu0 %v3583_v38  ;;  %v814_v37 = vld [vmem:[#allocation7 + $0x220] sm:$0xff] }
 0x140   :  { %v938_v38 = vld [vmem:[#allocation7 + $0x600] sm:$0xff]  ;;  %v3519_v39 = vcombine.high %v810_v36, %v814_v37  ;;  %v3518_v41 = vcombine.low %v810_v36, %v814_v37  ;;  %v779_v36 = vld [vmem:[#allocation7 + $0x108] sm:$0xff] }
 0x141   :  { %v3646_v42 = vcombine.low %v938_v38, %v942_v40  ;;  %v783_v37 = vld [vmem:[#allocation7 + $0x128] sm:$0xff] }
 0x142   :  { %2339 = vmatpush1.bf16.msra.mxu1 %v3454_v43  ;;  %2380 = vmatpush1.bf16.msra.mxu0 %v3582_v44  ;;  %v3647_v43 = vcombine.high %v938_v38, %v942_v40  ;;  %v803_v44 = vld [vmem:[#allocation7 + $0x1c8] sm:$0xff] }
 0x143   :  { %2340 = vmatprep.subr.bf16.mxu1 %v3575_v45  ;;  %2381 = vmatprep.subr.bf16.mxu0 %v3703_v46  ;;  %v807_v45 = vld [vmem:[#allocation7 + $0x1e8] sm:$0xff] }
 0x144   :  { %v931_v46 = vld [vmem:[#allocation7 + $0x5c8] sm:$0xff]  ;;  %v3513_v47 = vcombine.high %v803_v44, %v807_v45  ;;  %v3512_v49 = vcombine.low %v803_v44, %v807_v45 }
 0x145   :  { %v3640_v50 = vcombine.low %v931_v46, %v935_v48  ;;  %v907_v38 = vld [vmem:[#allocation7 + $0x508] sm:$0xff] }
 0x146   :  { %2341 = vmatpush2.bf16.msra.mxu1 %v3574_v51  ;;  %2382 = vmatpush2.bf16.msra.mxu0 %v3702_v52  ;;  %v3641_v51 = vcombine.high %v931_v46, %v935_v48  ;;  %v322_v52 = vsub.s32 2, %v4250_v28  ;;  %v771_v44 = vld [vmem:[#allocation7 + $0xc8] sm:$0xff]  ;;  %v3488_v48 = vcombine.low %v779_v36, %v783_v37 }
 0x147   :  { %2342 = vmatprep.subr.bf16.mxu1 %v3567_v53  ;;  %2383 = vmatprep.subr.bf16.mxu0 %v3695_v54  ;;  %v310_v53 = vld [vmem:[%s4331_s4] sm:$0xf]  ;;  %v326_v54 = vsub.s32 3, %v4250_v28  ;;  %v775_v45 = vld [vmem:[#allocation7 + $0xe8] sm:$0xff] }
 0x148   :  { %v315_v55 = vrot.slane %v310_v53, %v4253_v29  ;;  %v323_v56 = vrot.slane %v310_v53, %v322_v52  ;;  %v319_v57 = vrot.slane %v310_v53, %v4259_v31  ;;  %v899_v46 = vld [vmem:[#allocation7 + $0x4c8] sm:$0xff] }
 0x149   :  { %v327_v58 = vrot.slane %v310_v53, %v326_v54  ;;  %v763_v53 = vld [vmem:[#allocation7 + $0x88] sm:$0xff] }
 0x14a   :  { %2343 = vmatpush2.bf16.msra.mxu1 %v3566_v59  ;;  %2384 = vmatpush2.bf16.msra.mxu0 %v3694_v60 }
 0x14b   :  { %2344 = vmatprep.subr.bf16.mxu1 %v3559_v61  ;;  %2385 = vmatprep.subr.bf16.mxu0 %v3687_v62 }
 0x14e   :  { %2345 = vmatpush2.bf16.msra.mxu1 %v3558_v3  ;;  %2386 = vmatpush2.bf16.msra.mxu0 %v3686_v4 }
 0x14f   :  { %2346 = vmatprep.subr.bf16.mxu1 %v3551_v5  ;;  %2387 = vmatprep.subr.bf16.mxu0 %v3679_v6 }
 0x152   :  { %2347 = vmatpush2.bf16.msra.mxu1 %v3550_v11  ;;  %2388 = vmatpush2.bf16.msra.mxu0 %v3678_v12 }
 0x153   :  { %2348 = vmatprep.subr.bf16.mxu1 %v3543_v13  ;;  %2389 = vmatprep.subr.bf16.mxu0 %v3671_v14 }
 0x156   :  { %2349 = vmatpush2.bf16.msra.mxu1 %v3542_v19  ;;  %2390 = vmatpush2.bf16.msra.mxu0 %v3670_v20 }
 0x157   :  { %2350 = vmatprep.subr.bf16.mxu1 %v3535_v21  ;;  %2391 = vmatprep.subr.bf16.mxu0 %v3663_v22 }
 0x15a   :  { %2351 = vmatpush2.bf16.msra.mxu1 %v3534_v23  ;;  %2392 = vmatpush2.bf16.msra.mxu0 %v3662_v24  ;;  %v787_v23 = vld [vmem:[#allocation7 + $0x148] sm:$0xff]  ;;  %v3505_v24 = vcombine.high %v795_v15, %v799_v16 }
 0x15b   :  { %2352 = vmatprep.subr.bf16.mxu1 %v3527_v30  ;;  %2393 = vmatprep.subr.bf16.mxu0 %v3655_v35  ;;  %v919_v30 = vld [vmem:[#allocation7 + $0x568] sm:$0xff]  ;;  %v3496_v40 = vcombine.low %v787_v23, %v791_v26 }
 0x15c   :  { %v3625_v35 = vcombine.high %v915_v27, %v919_v30  ;;  %v871_v15 = vld [vmem:[#allocation7 + $0x3e8] sm:$0xff] }
 0x15d   :  { %v995_v16 = vld [vmem:[#allocation7 + $0x7c8] sm:$0xff] }
 0x15e   :  { %2353 = vmatpush2.bf16.msra.mxu1 %v3526_v33  ;;  %2394 = vmatpush2.bf16.msra.mxu0 %v3654_v34  ;;  %v3632_v33 = vcombine.low %v923_v17, %v927_v18  ;;  %v3497_v34 = vcombine.high %v787_v23, %v791_v26  ;;  %v999_v17 = vld [vmem:[#allocation7 + $0x7e8] sm:$0xff] }
 0x15f   :  { %2354 = vmatprep.subr.bf16.mxu1 %v3519_v39  ;;  %2395 = vmatprep.subr.bf16.mxu0 %v3647_v43  ;;  %v911_v39 = vld [vmem:[#allocation7 + $0x528] sm:$0xff] }
 0x160   :  { %v3617_v43 = vcombine.high %v907_v38, %v911_v39  ;;  %v859_v26 = vld [vmem:[#allocation7 + $0x388] sm:$0xff] }
 0x162   :  { %2355 = vmatpush2.bf16.msra.mxu1 %v3518_v41  ;;  %2396 = vmatpush2.bf16.msra.mxu0 %v3646_v42  ;;  %v3624_v41 = vcombine.low %v915_v27, %v919_v30  ;;  %v3489_v42 = vcombine.high %v779_v36, %v783_v37  ;;  %v863_v27 = vld [vmem:[#allocation7 + $0x3a8] sm:$0xff] }
 0x163   :  { %2406 = vmatprep.subr.bf16.mxu1 %v3513_v47  ;;  %2447 = vmatprep.subr.bf16.mxu0 %v3641_v51  ;;  %v903_v47 = vld [vmem:[#allocation7 + $0x4e8] sm:$0xff] }
 0x164   :  { %v3609_v51 = vcombine.high %v899_v46, %v903_v47  ;;  %v987_v30 = vld [vmem:[#allocation7 + $0x788] sm:$0xff] }
 0x165   :  { %v851_v37 = vld [vmem:[#allocation7 + $0x348] sm:$0xff] }
 0x1e5   :  { %v686_v59 = vpop.f32.mrf.mxu1  ;;  %v727_v60 = vpop.f32.mrf.mxu0 }
 0x1e6   :  { %v687_v61 = vadd.f32 %v686_v59, %v315_v55  ;;  %v728_v62 = vadd.f32 %v727_v60, %v323_v56  ;;  %v767_v55 = vld [vmem:[#allocation7 + $0xa8] sm:$0xff]  ;;  %v3608_v59 = vcombine.low %v899_v46, %v903_v47 }
 0x1e7   :  { %v688_v63 = vpop.f32.mrf.mxu1  ;;  %v729_v0 = vpop.f32.mrf.mxu0  ;;  %v891_v56 = vld [vmem:[#allocation7 + $0x488] sm:$0xff]  ;;  %v3473_v60 = vcombine.high %v763_v53, %v767_v55 }
 0x1e8   :  { %v734_v1 = vmul.f32 0.2, %v687_v61  ;;  %v736_v2 = vmul.f32 0.2, %v728_v62  ;;  %v689_v3 = vadd.f32 %v688_v63, %v319_v57  ;;  %v730_v4 = vadd.f32 %v729_v0, %v327_v58  ;;  %v895_v57 = vld [vmem:[#allocation7 + $0x4a8] sm:$0xff] }
 0x1e9   :  { %v690_v5 = vpop.f32.mrf.mxu1  ;;  %v731_v6 = vpop.f32.mrf.mxu0  ;;  %v3480_v58 = vcombine.low %v771_v44, %v775_v45  ;;  %v759_v63 = vld [vmem:[#allocation7 + $0x68] sm:$0xff] }
 0x1ea   :  { %v735_v7 = vmul.f32 0.2, %v689_v3  ;;  %v737_v8 = vmul.f32 0.2, %v730_v4  ;;  %v738_v9 = vmax.f32 %v687_v61, %v734_v1  ;;  %v740_v10 = vmax.f32 %v728_v62, %v736_v2  ;;  %v755_v62 = vld [vmem:[#allocation7 + $0x48] sm:$0xff] }
 0x1eb   :  { %v691_v11 = vpop.f32.mrf.mxu1  ;;  %v732_v12 = vpop.f32.mrf.mxu0  ;;  %v3601_v61 = vcombine.high %v891_v56, %v895_v57  ;;  %v883_v0 = vld [vmem:[#allocation7 + $0x448] sm:$0xff]  ;;  %v3472_v2 = vcombine.low %v763_v53, %v767_v55 }
 0x1ec   :  { %v739_v13 = vmax.f32 %v689_v3, %v735_v7  ;;  %v741_v14 = vmax.f32 %v730_v4, %v737_v8  ;;  %v4278_v21 = vpack.c.bf16 %v738_v9, %v738_v9  ;;  %v4280_v22 = vpack.c.bf16 %v740_v10, %v740_v10  ;;  %v887_v1 = vld [vmem:[#allocation7 + $0x468] sm:$0xff] }
 0x1ed   :  { %v3600_v3 = vcombine.low %v891_v56, %v895_v57  ;;  %v3465_v4 = vcombine.high %v755_v62, %v759_v63  ;;  %v3593_v5 = vcombine.high %v883_v0, %v887_v1  ;;  %v747_v6 = vld [vmem:[#allocation7 + $0x8] sm:$0xff]  ;;  %v3464_v10 = vcombine.low %v755_v62, %v759_v63 }
 0x1ee   :  { %v4274_v19 = vpack.c.bf16 %v739_v13, %v739_v13  ;;  %v4276_v20 = vpack.c.bf16 %v741_v14, %v741_v14  ;;  %v751_v7 = vld [vmem:[#allocation7 + $0x28] sm:$0xff]  ;;  %v3592_v11 = vcombine.low %v883_v0, %v887_v1 }
 0x1ef   :  { %v875_v8 = vld [vmem:[#allocation7 + $0x408] sm:$0xff]  ;;  %v3457_v12 = vcombine.high %v747_v6, %v751_v7  ;;  %v3456_v18 = vcombine.low %v747_v6, %v751_v7 }
 0x1f0   :  { %2356 = vmatprep.mubr.bf16.mxu1 %v4274_v19  ;;  %2397 = vmatprep.mubr.bf16.mxu0 %v4276_v20  ;;  %v879_v9 = vld [vmem:[#allocation7 + $0x428] sm:$0xff] }
 0x1f1   :  { %2357 = vmatmul.mubr.bf16.vlgmr.msra.gmra.mxu1 %v4278_v21  ;;  %2398 = vmatmul.mubr.bf16.vlgmr.msra.gmra.mxu0 %v4280_v22  ;;  %v3585_v13 = vcombine.high %v875_v8, %v879_v9  ;;  %v867_v14 = vld [vmem:[#allocation7 + $0x3c8] sm:$0xff]  ;;  %v3584_v23 = vcombine.low %v875_v8, %v879_v9 }
 0x1f2   :  { %2407 = vmatpush1.bf16.msra.mxu1 %v3512_v49  ;;  %2448 = vmatpush1.bf16.msra.mxu0 %v3640_v50  ;;  %v3616_v49 = vcombine.low %v907_v38, %v911_v39  ;;  %v3481_v50 = vcombine.high %v771_v44, %v775_v45  ;;  %v855_v38 = vld [vmem:[#allocation7 + $0x368] sm:$0xff] }
 0x1f3   :  { %2438 = vmatprep.mubr.bf16.mxu1 %v4274_v19  ;;  %2479 = vmatprep.mubr.bf16.mxu0 %v4276_v20  ;;  %v979_v39 = vld [vmem:[#allocation7 + $0x748] sm:$0xff] }
 0x1f4   :  { %2408 = vmatprep.subr.bf16.mxu1 %v3505_v24  ;;  %2449 = vmatprep.subr.bf16.mxu0 %v3633_v25  ;;  %v3577_v24 = vcombine.high %v867_v14, %v871_v15  ;;  %v3705_v25 = vcombine.high %v995_v16, %v999_v17  ;;  %v843_v45 = vld [vmem:[#allocation7 + $0x308] sm:$0xff] }
 0x1f5   :  { %v847_v46 = vld [vmem:[#allocation7 + $0x328] sm:$0xff] }
 0x1f6   :  { %2409 = vmatpush1.bf16.msra.mxu1 %v3504_v32  ;;  %2450 = vmatpush1.bf16.msra.mxu0 %v3632_v33  ;;  %v991_v32 = vld [vmem:[#allocation7 + $0x7a8] sm:$0xff]  ;;  %v3576_v33 = vcombine.low %v867_v14, %v871_v15 }
 0x1f7   :  { %2410 = vmatprep.subr.bf16.mxu1 %v3497_v34  ;;  %2451 = vmatprep.subr.bf16.mxu0 %v3625_v35  ;;  %v3704_v34 = vcombine.low %v995_v16, %v999_v17  ;;  %v3569_v35 = vcombine.high %v859_v26, %v863_v27  ;;  %v3697_v36 = vcombine.high %v987_v30, %v991_v32  ;;  %v971_v47 = vld [vmem:[#allocation7 + $0x708] sm:$0xff] }
 0x1f8   :  { %v835_v55 = vld [vmem:[#allocation7 + $0x2c8] sm:$0xff] }
 0x1f9   :  { %v839_v56 = vld [vmem:[#allocation7 + $0x2e8] sm:$0xff] }
 0x1fa   :  { %2411 = vmatpush1.bf16.msra.mxu1 %v3496_v40  ;;  %2452 = vmatpush1.bf16.msra.mxu0 %v3624_v41  ;;  %v983_v40 = vld [vmem:[#allocation7 + $0x768] sm:$0xff]  ;;  %v3568_v41 = vcombine.low %v859_v26, %v863_v27  ;;  %v804_v27 = vld [vmem:[#allocation7 + $0x1d0] sm:$0xff] }
 0x1fb   :  { %2412 = vmatprep.subr.bf16.mxu1 %v3489_v42  ;;  %2453 = vmatprep.subr.bf16.mxu0 %v3617_v43  ;;  %v3696_v42 = vcombine.low %v987_v30, %v991_v32  ;;  %v3561_v43 = vcombine.high %v851_v37, %v855_v38  ;;  %v3689_v44 = vcombine.high %v979_v39, %v983_v40  ;;  %v963_v57 = vld [vmem:[#allocation7 + $0x6c8] sm:$0xff]  ;;  %v808_v30 = vld [vmem:[#allocation7 + $0x1f0] sm:$0xff] }
 0x1fc   :  { %v827_v63 = vld [vmem:[#allocation7 + $0x288] sm:$0xff]  ;;  %v932_v32 = vld [vmem:[#allocation7 + $0x5d0] sm:$0xff] }
 0x1fd   :  { %v831_v0 = vld [vmem:[#allocation7 + $0x2a8] sm:$0xff] }
 0x1fe   :  { %2413 = vmatpush1.bf16.msra.mxu1 %v3488_v48  ;;  %2454 = vmatpush1.bf16.msra.mxu0 %v3616_v49  ;;  %v975_v48 = vld [vmem:[#allocation7 + $0x728] sm:$0xff]  ;;  %v3560_v49 = vcombine.low %v851_v37, %v855_v38  ;;  %v796_v38 = vld [vmem:[#allocation7 + $0x190] sm:$0xff] }
 0x1ff   :  { %2414 = vmatprep.subr.bf16.mxu1 %v3481_v50  ;;  %2455 = vmatprep.subr.bf16.mxu0 %v3609_v51  ;;  %v3688_v50 = vcombine.low %v979_v39, %v983_v40  ;;  %v3553_v51 = vcombine.high %v843_v45, %v847_v46  ;;  %v3681_v53 = vcombine.high %v971_v47, %v975_v48  ;;  %v955_v1 = vld [vmem:[#allocation7 + $0x688] sm:$0xff]  ;;  %v800_v39 = vld [vmem:[#allocation7 + $0x1b0] sm:$0xff] }
 0x200   :  { %v819_v7 = vld [vmem:[#allocation7 + $0x248] sm:$0xff]  ;;  %v924_v40 = vld [vmem:[#allocation7 + $0x590] sm:$0xff] }
 0x201   :  { %v823_v8 = vld [vmem:[#allocation7 + $0x268] sm:$0xff] }
 0x202   :  { %2415 = vmatpush1.bf16.msra.mxu1 %v3480_v58  ;;  %2456 = vmatpush1.bf16.msra.mxu0 %v3608_v59  ;;  %v967_v58 = vld [vmem:[#allocation7 + $0x6e8] sm:$0xff]  ;;  %v3552_v59 = vcombine.low %v843_v45, %v847_v46  ;;  %v788_v46 = vld [vmem:[#allocation7 + $0x150] sm:$0xff] }
 0x203   :  { %2416 = vmatprep.subr.bf16.mxu1 %v3473_v60  ;;  %2457 = vmatprep.subr.bf16.mxu0 %v3601_v61  ;;  %v3680_v60 = vcombine.low %v971_v47, %v975_v48  ;;  %v3545_v61 = vcombine.high %v835_v55, %v839_v56  ;;  %v3673_v62 = vcombine.high %v963_v57, %v967_v58  ;;  %v947_v9 = vld [vmem:[#allocation7 + $0x648] sm:$0xff]  ;;  %v792_v47 = vld [vmem:[#allocation7 + $0x170] sm:$0xff] }
 0x204   :  { %v811_v15 = vld [vmem:[#allocation7 + $0x208] sm:$0xff]  ;;  %v916_v48 = vld [vmem:[#allocation7 + $0x550] sm:$0xff] }
 0x205   :  { %v815_v16 = vld [vmem:[#allocation7 + $0x228] sm:$0xff] }
 0x206   :  { %2417 = vmatpush1.bf16.msra.mxu1 %v3472_v2  ;;  %2458 = vmatpush1.bf16.msra.mxu0 %v3600_v3  ;;  %v959_v2 = vld [vmem:[#allocation7 + $0x6a8] sm:$0xff]  ;;  %v3544_v3 = vcombine.low %v835_v55, %v839_v56  ;;  %v780_v56 = vld [vmem:[#allocation7 + $0x110] sm:$0xff] }
 0x207   :  { %2418 = vmatprep.subr.bf16.mxu1 %v3465_v4  ;;  %2459 = vmatprep.subr.bf16.mxu0 %v3593_v5  ;;  %v3672_v4 = vcombine.low %v963_v57, %v967_v58  ;;  %v3537_v5 = vcombine.high %v827_v63, %v831_v0  ;;  %v3665_v6 = vcombine.high %v955_v1, %v959_v2  ;;  %v939_v17 = vld [vmem:[#allocation7 + $0x608] sm:$0xff]  ;;  %v784_v57 = vld [vmem:[#allocation7 + $0x130] sm:$0xff] }
 0x208   :  { %v908_v58 = vld [vmem:[#allocation7 + $0x510] sm:$0xff] }
 0x20a   :  { %2419 = vmatpush1.bf16.msra.mxu1 %v3464_v10  ;;  %2460 = vmatpush1.bf16.msra.mxu0 %v3592_v11  ;;  %v951_v10 = vld [vmem:[#allocation7 + $0x668] sm:$0xff]  ;;  %v3536_v11 = vcombine.low %v827_v63, %v831_v0  ;;  %v772_v0 = vld [vmem:[#allocation7 + $0xd0] sm:$0xff] }
 0x20b   :  { %2420 = vmatprep.subr.bf16.mxu1 %v3457_v12  ;;  %2461 = vmatprep.subr.bf16.mxu0 %v3585_v13  ;;  %v3664_v12 = vcombine.low %v955_v1, %v959_v2  ;;  %v3529_v13 = vcombine.high %v819_v7, %v823_v8  ;;  %v3657_v14 = vcombine.high %v947_v9, %v951_v10  ;;  %v776_v1 = vld [vmem:[#allocation7 + $0xf0] sm:$0xff] }
 0x20c   :  { %v900_v2 = vld [vmem:[#allocation7 + $0x4d0] sm:$0xff] }
 0x20e   :  { %2421 = vmatpush1.bf16.msra.mxu1 %v3456_v18  ;;  %2462 = vmatpush1.bf16.msra.mxu0 %v3584_v23  ;;  %v943_v18 = vld [vmem:[#allocation7 + $0x628] sm:$0xff]  ;;  %v3528_v23 = vcombine.low %v819_v7, %v823_v8  ;;  %v764_v8 = vld [vmem:[#allocation7 + $0x90] sm:$0xff] }
 0x20f   :  { %2422 = vmatprep.subr.bf16.mxu1 %v3577_v24  ;;  %2463 = vmatprep.subr.bf16.mxu0 %v3705_v25  ;;  %v3656_v24 = vcombine.low %v947_v9, %v951_v10  ;;  %v3521_v25 = vcombine.high %v811_v15, %v815_v16  ;;  %v3649_v26 = vcombine.high %v939_v17, %v943_v18  ;;  %v768_v9 = vld [vmem:[#allocation7 + $0xb0] sm:$0xff] }
 0x210   :  { %v892_v10 = vld [vmem:[#allocation7 + $0x490] sm:$0xff] }
 0x212   :  { %2423 = vmatpush2.bf16.msra.mxu1 %v3576_v33  ;;  %2464 = vmatpush2.bf16.msra.mxu0 %v3704_v34  ;;  %v936_v33 = vld [vmem:[#allocation7 + $0x5f0] sm:$0xff]  ;;  %v3520_v34 = vcombine.low %v811_v15, %v815_v16 }
 0x213   :  { %2424 = vmatprep.subr.bf16.mxu1 %v3569_v35  ;;  %2465 = vmatprep.subr.bf16.mxu0 %v3697_v36  ;;  %v3648_v35 = vcombine.low %v939_v17, %v943_v18  ;;  %v3515_v36 = vcombine.high %v804_v27, %v808_v30  ;;  %v3643_v37 = vcombine.high %v932_v32, %v936_v33  ;;  %v756_v16 = vld [vmem:[#allocation7 + $0x50] sm:$0xff] }
 0x214   :  { %v760_v17 = vld [vmem:[#allocation7 + $0x70] sm:$0xff] }
 0x215   :  { %v884_v18 = vld [vmem:[#allocation7 + $0x450] sm:$0xff] }
 0x216   :  { %2425 = vmatpush2.bf16.msra.mxu1 %v3568_v41  ;;  %2466 = vmatpush2.bf16.msra.mxu0 %v3696_v42  ;;  %v928_v41 = vld [vmem:[#allocation7 + $0x5b0] sm:$0xff]  ;;  %v3514_v42 = vcombine.low %v804_v27, %v808_v30 }
 0x217   :  { %2426 = vmatprep.subr.bf16.mxu1 %v3561_v43  ;;  %2467 = vmatprep.subr.bf16.mxu0 %v3689_v44  ;;  %v3642_v43 = vcombine.low %v932_v32, %v936_v33  ;;  %v3507_v44 = vcombine.high %v796_v38, %v800_v39  ;;  %v3635_v45 = vcombine.high %v924_v40, %v928_v41  ;;  %v748_v30 = vld [vmem:[#allocation7 + $0x10] sm:$0xff] }
 0x218   :  { %v752_v32 = vld [vmem:[#allocation7 + $0x30] sm:$0xff] }
 0x219   :  { %v876_v33 = vld [vmem:[#allocation7 + $0x410] sm:$0xff] }
 0x21a   :  { %2427 = vmatpush2.bf16.msra.mxu1 %v3560_v49  ;;  %2468 = vmatpush2.bf16.msra.mxu0 %v3688_v50  ;;  %v920_v49 = vld [vmem:[#allocation7 + $0x570] sm:$0xff]  ;;  %v3506_v50 = vcombine.low %v796_v38, %v800_v39 }
 0x21b   :  { %2428 = vmatprep.subr.bf16.mxu1 %v3553_v51  ;;  %2469 = vmatprep.subr.bf16.mxu0 %v3681_v53  ;;  %v3634_v51 = vcombine.low %v924_v40, %v928_v41  ;;  %v3499_v53 = vcombine.high %v788_v46, %v792_v47  ;;  %v3627_v55 = vcombine.high %v916_v48, %v920_v49  ;;  %v868_v39 = vld [vmem:[#allocation7 + $0x3d0] sm:$0xff] }
 0x21c   :  { %v872_v40 = vld [vmem:[#allocation7 + $0x3f0] sm:$0xff] }
 0x21d   :  { %v996_v41 = vld [vmem:[#allocation7 + $0x7d0] sm:$0xff] }
 0x21e   :  { %2429 = vmatpush2.bf16.msra.mxu1 %v3552_v59  ;;  %2470 = vmatpush2.bf16.msra.mxu0 %v3680_v60  ;;  %v912_v59 = vld [vmem:[#allocation7 + $0x530] sm:$0xff]  ;;  %v3498_v60 = vcombine.low %v788_v46, %v792_v47 }
 0x21f   :  { %2430 = vmatprep.subr.bf16.mxu1 %v3545_v61  ;;  %2471 = vmatprep.subr.bf16.mxu0 %v3673_v62  ;;  %v3626_v61 = vcombine.low %v916_v48, %v920_v49  ;;  %v3491_v62 = vcombine.high %v780_v56, %v784_v57  ;;  %v3619_v63 = vcombine.high %v908_v58, %v912_v59  ;;  %v860_v47 = vld [vmem:[#allocation7 + $0x390] sm:$0xff] }
 0x220   :  { %v864_v48 = vld [vmem:[#allocation7 + $0x3b0] sm:$0xff] }
 0x221   :  { %v988_v49 = vld [vmem:[#allocation7 + $0x790] sm:$0xff] }
 0x222   :  { %2431 = vmatpush2.bf16.msra.mxu1 %v3544_v3  ;;  %2472 = vmatpush2.bf16.msra.mxu0 %v3672_v4  ;;  %v904_v3 = vld [vmem:[#allocation7 + $0x4f0] sm:$0xff]  ;;  %v3490_v4 = vcombine.low %v780_v56, %v784_v57 }
 0x223   :  { %2432 = vmatprep.subr.bf16.mxu1 %v3537_v5  ;;  %2473 = vmatprep.subr.bf16.mxu0 %v3665_v6  ;;  %v3618_v5 = vcombine.low %v908_v58, %v912_v59  ;;  %v3483_v6 = vcombine.high %v772_v0, %v776_v1  ;;  %v3611_v7 = vcombine.high %v900_v2, %v904_v3  ;;  %v852_v57 = vld [vmem:[#allocation7 + $0x350] sm:$0xff] }
 0x224   :  { %v856_v58 = vld [vmem:[#allocation7 + $0x370] sm:$0xff] }
 0x225   :  { %v980_v59 = vld [vmem:[#allocation7 + $0x750] sm:$0xff] }
 0x226   :  { %2433 = vmatpush2.bf16.msra.mxu1 %v3536_v11  ;;  %2474 = vmatpush2.bf16.msra.mxu0 %v3664_v12  ;;  %v896_v11 = vld [vmem:[#allocation7 + $0x4b0] sm:$0xff]  ;;  %v3482_v12 = vcombine.low %v772_v0, %v776_v1 }
 0x227   :  { %2434 = vmatprep.subr.bf16.mxu1 %v3529_v13  ;;  %2475 = vmatprep.subr.bf16.mxu0 %v3657_v14  ;;  %v3610_v13 = vcombine.low %v900_v2, %v904_v3  ;;  %v3475_v14 = vcombine.high %v764_v8, %v768_v9  ;;  %v3603_v15 = vcombine.high %v892_v10, %v896_v11  ;;  %v844_v1 = vld [vmem:[#allocation7 + $0x310] sm:$0xff] }
 0x228   :  { %v848_v2 = vld [vmem:[#allocation7 + $0x330] sm:$0xff] }
 0x229   :  { %v972_v3 = vld [vmem:[#allocation7 + $0x710] sm:$0xff] }
 0x22a   :  { %2435 = vmatpush2.bf16.msra.mxu1 %v3528_v23  ;;  %2476 = vmatpush2.bf16.msra.mxu0 %v3656_v24  ;;  %v888_v23 = vld [vmem:[#allocation7 + $0x470] sm:$0xff]  ;;  %v3474_v24 = vcombine.low %v764_v8, %v768_v9 }
 0x22b   :  { %2436 = vmatprep.subr.bf16.mxu1 %v3521_v25  ;;  %2477 = vmatprep.subr.bf16.mxu0 %v3649_v26  ;;  %v3602_v25 = vcombine.low %v892_v10, %v896_v11  ;;  %v3467_v26 = vcombine.high %v756_v16, %v760_v17  ;;  %v3595_v27 = vcombine.high %v884_v18, %v888_v23  ;;  %v836_v9 = vld [vmem:[#allocation7 + $0x2d0] sm:$0xff] }
 0x22c   :  { %v840_v10 = vld [vmem:[#allocation7 + $0x2f0] sm:$0xff] }
 0x22d   :  { %v964_v11 = vld [vmem:[#allocation7 + $0x6d0] sm:$0xff] }
 0x22e   :  { %2437 = vmatpush2.bf16.msra.mxu1 %v3520_v34  ;;  %2478 = vmatpush2.bf16.msra.mxu0 %v3648_v35  ;;  %v880_v34 = vld [vmem:[#allocation7 + $0x430] sm:$0xff]  ;;  %v3466_v35 = vcombine.low %v756_v16, %v760_v17 }
 0x22f   :  { %2488 = vmatprep.subr.bf16.mxu1 %v3515_v36  ;;  %2529 = vmatprep.subr.bf16.mxu0 %v3643_v37  ;;  %v3594_v36 = vcombine.low %v884_v18, %v888_v23  ;;  %v3459_v37 = vcombine.high %v748_v30, %v752_v32  ;;  %v3587_v38 = vcombine.high %v876_v33, %v880_v34  ;;  %v828_v17 = vld [vmem:[#allocation7 + $0x290] sm:$0xff] }
 0x230   :  { %v832_v18 = vld [vmem:[#allocation7 + $0x2b0] sm:$0xff] }
 0x231   :  { %2439 = vmatmul.mubr.bf16.vlgmr.msra.gmra.mxu1 %v4278_v21  ;;  %2480 = vmatmul.mubr.bf16.vlgmr.msra.gmra.mxu0 %v4280_v22  ;;  %v956_v23 = vld [vmem:[#allocation7 + $0x690] sm:$0xff] }
 0x232   :  { %2489 = vmatpush1.bf16.msra.mxu1 %v3514_v42  ;;  %2520 = vmatprep.mubr.bf16.mxu1 %v4274_v19  ;;  %v1000_v42 = vld [vmem:[#allocation7 + $0x7f0] sm:$0xff] }
 0x233   :  { %2530 = vmatpush1.bf16.msra.mxu0 %v3642_v43  ;;  %2561 = vmatprep.mubr.bf16.mxu0 %v4276_v20  ;;  %v3458_v43 = vcombine.low %v748_v30, %v752_v32  ;;  %v3707_v46 = vcombine.high %v996_v41, %v1000_v42  ;;  %v820_v32 = vld [vmem:[#allocation7 + $0x250] sm:$0xff] }
 0x234   :  { %2490 = vmatprep.subr.bf16.mxu1 %v3507_v44  ;;  %2531 = vmatprep.subr.bf16.mxu0 %v3635_v45  ;;  %v3586_v44 = vcombine.low %v876_v33, %v880_v34  ;;  %v3579_v45 = vcombine.high %v868_v39, %v872_v40  ;;  %v824_v33 = vld [vmem:[#allocation7 + $0x270] sm:$0xff] }
 0x235   :  { %v948_v34 = vld [vmem:[#allocation7 + $0x650] sm:$0xff] }
 0x236   :  { %2491 = vmatpush1.bf16.msra.mxu1 %v3506_v50  ;;  %v992_v50 = vld [vmem:[#allocation7 + $0x7b0] sm:$0xff] }
 0x237   :  { %2532 = vmatpush1.bf16.msra.mxu0 %v3634_v51  ;;  %2492 = vmatprep.subr.bf16.mxu1 %v3499_v53  ;;  %v3578_v51 = vcombine.low %v868_v39, %v872_v40  ;;  %v3706_v53 = vcombine.low %v996_v41, %v1000_v42  ;;  %v3699_v56 = vcombine.high %v988_v49, %v992_v50  ;;  %v812_v40 = vld [vmem:[#allocation7 + $0x210] sm:$0xff] }
 0x238   :  { %2533 = vmatprep.subr.bf16.mxu0 %v3627_v55  ;;  %v3571_v55 = vcombine.high %v860_v47, %v864_v48  ;;  %v816_v41 = vld [vmem:[#allocation7 + $0x230] sm:$0xff] }
 0x239   :  { %v940_v42 = vld [vmem:[#allocation7 + $0x610] sm:$0xff] }
 0x23a   :  { %2493 = vmatpush1.bf16.msra.mxu1 %v3498_v60  ;;  %v984_v60 = vld [vmem:[#allocation7 + $0x770] sm:$0xff] }
 0x23b   :  { %2534 = vmatpush1.bf16.msra.mxu0 %v3626_v61  ;;  %2494 = vmatprep.subr.bf16.mxu1 %v3491_v62  ;;  %v3570_v61 = vcombine.low %v860_v47, %v864_v48  ;;  %v3698_v62 = vcombine.low %v988_v49, %v992_v50  ;;  %v3691_v0 = vcombine.high %v980_v59, %v984_v60  ;;  %v805_v48 = vld [vmem:[#allocation7 + $0x1d8] sm:$0xff] }
 0x23c   :  { %2535 = vmatprep.subr.bf16.mxu0 %v3619_v63  ;;  %v3563_v63 = vcombine.high %v852_v57, %v856_v58  ;;  %v809_v49 = vld [vmem:[#allocation7 + $0x1f8] sm:$0xff] }
 0x23d   :  { %v933_v50 = vld [vmem:[#allocation7 + $0x5d8] sm:$0xff] }
 0x23e   :  { %2495 = vmatpush1.bf16.msra.mxu1 %v3490_v4  ;;  %v976_v4 = vld [vmem:[#allocation7 + $0x730] sm:$0xff] }
 0x23f   :  { %2536 = vmatpush1.bf16.msra.mxu0 %v3618_v5  ;;  %2496 = vmatprep.subr.bf16.mxu1 %v3483_v6  ;;  %v3562_v5 = vcombine.low %v852_v57, %v856_v58  ;;  %v3690_v6 = vcombine.low %v980_v59, %v984_v60  ;;  %v3683_v8 = vcombine.high %v972_v3, %v976_v4  ;;  %v797_v58 = vld [vmem:[#allocation7 + $0x198] sm:$0xff] }
 0x240   :  { %2537 = vmatprep.subr.bf16.mxu0 %v3611_v7  ;;  %v3555_v7 = vcombine.high %v844_v1, %v848_v2  ;;  %v801_v59 = vld [vmem:[#allocation7 + $0x1b8] sm:$0xff]  ;;  %v3516_v60 = vcombine.low %v805_v48, %v809_v49 }
 0x242   :  { %2497 = vmatpush1.bf16.msra.mxu1 %v3482_v12  ;;  %v968_v12 = vld [vmem:[#allocation7 + $0x6f0] sm:$0xff] }
 0x243   :  { %2538 = vmatpush1.bf16.msra.mxu0 %v3610_v13  ;;  %2498 = vmatprep.subr.bf16.mxu1 %v3475_v14  ;;  %v3554_v13 = vcombine.low %v844_v1, %v848_v2  ;;  %v3682_v14 = vcombine.low %v972_v3, %v976_v4  ;;  %v3675_v16 = vcombine.high %v964_v11, %v968_v12  ;;  %v789_v1 = vld [vmem:[#allocation7 + $0x158] sm:$0xff] }
 0x244   :  { %2539 = vmatprep.subr.bf16.mxu0 %v3603_v15  ;;  %v3547_v15 = vcombine.high %v836_v9, %v840_v10  ;;  %v793_v2 = vld [vmem:[#allocation7 + $0x178] sm:$0xff] }
 0x245   :  { %v917_v4 = vld [vmem:[#allocation7 + $0x558] sm:$0xff] }
 0x246   :  { %2499 = vmatpush1.bf16.msra.mxu1 %v3474_v24  ;;  %v960_v24 = vld [vmem:[#allocation7 + $0x6b0] sm:$0xff] }
 0x247   :  { %2540 = vmatpush1.bf16.msra.mxu0 %v3602_v25  ;;  %2500 = vmatprep.subr.bf16.mxu1 %v3467_v26  ;;  %v3546_v25 = vcombine.low %v836_v9, %v840_v10  ;;  %v3674_v26 = vcombine.low %v964_v11, %v968_v12  ;;  %v3667_v30 = vcombine.high %v956_v23, %v960_v24  ;;  %v781_v10 = vld [vmem:[#allocation7 + $0x118] sm:$0xff] }
 0x248   :  { %2541 = vmatprep.subr.bf16.mxu0 %v3595_v27  ;;  %v3539_v27 = vcombine.high %v828_v17, %v832_v18  ;;  %v785_v11 = vld [vmem:[#allocation7 + $0x138] sm:$0xff] }
 0x249   :  { %v909_v12 = vld [vmem:[#allocation7 + $0x518] sm:$0xff] }
 0x24a   :  { %2501 = vmatpush1.bf16.msra.mxu1 %v3466_v35  ;;  %v952_v35 = vld [vmem:[#allocation7 + $0x670] sm:$0xff] }
 0x24b   :  { %2542 = vmatpush1.bf16.msra.mxu0 %v3594_v36  ;;  %2502 = vmatprep.subr.bf16.mxu1 %v3459_v37  ;;  %v3538_v36 = vcombine.low %v828_v17, %v832_v18  ;;  %v3666_v37 = vcombine.low %v956_v23, %v960_v24  ;;  %v3659_v39 = vcombine.high %v948_v34, %v952_v35  ;;  %v773_v17 = vld [vmem:[#allocation7 + $0xd8] sm:$0xff] }
 0x24c   :  { %2543 = vmatprep.subr.bf16.mxu0 %v3587_v38  ;;  %v3531_v38 = vcombine.high %v820_v32, %v824_v33  ;;  %v777_v18 = vld [vmem:[#allocation7 + $0xf8] sm:$0xff] }
 0x24d   :  { %v901_v23 = vld [vmem:[#allocation7 + $0x4d8] sm:$0xff] }
 0x24e   :  { %2503 = vmatpush1.bf16.msra.mxu1 %v3458_v43  ;;  %v944_v43 = vld [vmem:[#allocation7 + $0x630] sm:$0xff]  ;;  %v905_v24 = vld [vmem:[#allocation7 + $0x4f8] sm:$0xff] }
 0x24f   :  { %2544 = vmatpush1.bf16.msra.mxu0 %v3586_v44  ;;  %2504 = vmatprep.subr.bf16.mxu1 %v3579_v45  ;;  %v3530_v44 = vcombine.low %v820_v32, %v824_v33  ;;  %v3658_v45 = vcombine.low %v948_v34, %v952_v35  ;;  %v3651_v47 = vcombine.high %v940_v42, %v944_v43  ;;  %v769_v32 = vld [vmem:[#allocation7 + $0xb8] sm:$0xff] }
 0x250   :  { %2545 = vmatprep.subr.bf16.mxu0 %v3707_v46  ;;  %v3523_v46 = vcombine.high %v812_v40, %v816_v41  ;;  %v893_v33 = vld [vmem:[#allocation7 + $0x498] sm:$0xff]  ;;  %v3484_v35 = vcombine.low %v773_v17, %v777_v18 }
 0x251   :  { %v897_v34 = vld [vmem:[#allocation7 + $0x4b8] sm:$0xff] }
 0x252   :  { %2505 = vmatpush2.bf16.msra.mxu1 %v3578_v51  ;;  %v937_v51 = vld [vmem:[#allocation7 + $0x5f8] sm:$0xff] }
 0x253   :  { %2546 = vmatpush2.bf16.msra.mxu0 %v3706_v53  ;;  %2506 = vmatprep.subr.bf16.mxu1 %v3571_v55  ;;  %v3522_v53 = vcombine.low %v812_v40, %v816_v41  ;;  %v3650_v55 = vcombine.low %v940_v42, %v944_v43  ;;  %v3645_v57 = vcombine.high %v933_v50, %v937_v51  ;;  %v761_v40 = vld [vmem:[#allocation7 + $0x78] sm:$0xff] }
 0x254   :  { %2547 = vmatprep.subr.bf16.mxu0 %v3699_v56  ;;  %v3517_v56 = vcombine.high %v805_v48, %v809_v49  ;;  %v885_v41 = vld [vmem:[#allocation7 + $0x458] sm:$0xff] }
 0x255   :  { %v889_v42 = vld [vmem:[#allocation7 + $0x478] sm:$0xff] }
 0x256   :  { %2507 = vmatpush2.bf16.msra.mxu1 %v3570_v61  ;;  %v925_v61 = vld [vmem:[#allocation7 + $0x598] sm:$0xff] }
 0x257   :  { %2548 = vmatpush2.bf16.msra.mxu0 %v3698_v62  ;;  %2508 = vmatprep.subr.bf16.mxu1 %v3563_v63  ;;  %v929_v62 = vld [vmem:[#allocation7 + $0x5b8] sm:$0xff]  ;;  %v3644_v63 = vcombine.low %v933_v50, %v937_v51 }
 0x258   :  { %2549 = vmatprep.subr.bf16.mxu0 %v3691_v0  ;;  %v3509_v0 = vcombine.high %v797_v58, %v801_v59  ;;  %v3637_v3 = vcombine.high %v925_v61, %v929_v62  ;;  %v753_v48 = vld [vmem:[#allocation7 + $0x38] sm:$0xff] }
 0x259   :  { %v877_v49 = vld [vmem:[#allocation7 + $0x418] sm:$0xff] }
 0x25a   :  { %2509 = vmatpush2.bf16.msra.mxu1 %v3562_v5  ;;  %v921_v5 = vld [vmem:[#allocation7 + $0x578] sm:$0xff] }
 0x25b   :  { %2550 = vmatpush2.bf16.msra.mxu0 %v3690_v6  ;;  %2510 = vmatprep.subr.bf16.mxu1 %v3555_v7  ;;  %v3508_v6 = vcombine.low %v797_v58, %v801_v59  ;;  %v3636_v7 = vcombine.low %v925_v61, %v929_v62  ;;  %v3629_v9 = vcombine.high %v917_v4, %v921_v5  ;;  %v881_v50 = vld [vmem:[#allocation7 + $0x438] sm:$0xff] }
 0x25c   :  { %2551 = vmatprep.subr.bf16.mxu0 %v3683_v8  ;;  %v3501_v8 = vcombine.high %v789_v1, %v793_v2  ;;  %v873_v58 = vld [vmem:[#allocation7 + $0x3f8] sm:$0xff]  ;;  %v3588_v62 = vcombine.low %v877_v49, %v881_v50 }
 0x25d   :  { %v997_v59 = vld [vmem:[#allocation7 + $0x7d8] sm:$0xff] }
 0x25e   :  { %2511 = vmatpush2.bf16.msra.mxu1 %v3554_v13  ;;  %v913_v13 = vld [vmem:[#allocation7 + $0x538] sm:$0xff] }
 0x25f   :  { %2552 = vmatpush2.bf16.msra.mxu0 %v3682_v14  ;;  %2512 = vmatprep.subr.bf16.mxu1 %v3547_v15  ;;  %v3500_v14 = vcombine.low %v789_v1, %v793_v2  ;;  %v3628_v15 = vcombine.low %v917_v4, %v921_v5  ;;  %v861_v1 = vld [vmem:[#allocation7 + $0x398] sm:$0xff] }
 0x260   :  { %2553 = vmatprep.subr.bf16.mxu0 %v3675_v16  ;;  %v3493_v16 = vcombine.high %v781_v10, %v785_v11  ;;  %v865_v2 = vld [vmem:[#allocation7 + $0x3b8] sm:$0xff] }
 0x261   :  { %v993_v4 = vld [vmem:[#allocation7 + $0x7b8] sm:$0xff] }
 0x262   :  { %2513 = vmatpush2.bf16.msra.mxu1 %v3546_v25  ;;  %v3620_v25 = vcombine.low %v909_v12, %v913_v13 }
 0x263   :  { %2554 = vmatpush2.bf16.msra.mxu0 %v3674_v26  ;;  %2514 = vmatprep.subr.bf16.mxu1 %v3539_v27  ;;  %v3485_v26 = vcombine.high %v773_v17, %v777_v18  ;;  %v3613_v27 = vcombine.high %v901_v23, %v905_v24  ;;  %v849_v17 = vld [vmem:[#allocation7 + $0x338] sm:$0xff] }
 0x264   :  { %2555 = vmatprep.subr.bf16.mxu0 %v3667_v30  ;;  %v765_v30 = vld [vmem:[#allocation7 + $0x98] sm:$0xff] }
 0x265   :  { %v3476_v43 = vcombine.low %v765_v30, %v769_v32  ;;  %v973_v18 = vld [vmem:[#allocation7 + $0x718] sm:$0xff] }
 0x266   :  { %2515 = vmatpush2.bf16.msra.mxu1 %v3538_v36  ;;  %v3612_v36 = vcombine.low %v901_v23, %v905_v24  ;;  %v977_v23 = vld [vmem:[#allocation7 + $0x738] sm:$0xff] }
 0x267   :  { %2556 = vmatpush2.bf16.msra.mxu0 %v3666_v37  ;;  %2516 = vmatprep.subr.bf16.mxu1 %v3531_v38  ;;  %v3477_v37 = vcombine.high %v765_v30, %v769_v32  ;;  %v3605_v38 = vcombine.high %v893_v33, %v897_v34  ;;  %v841_v30 = vld [vmem:[#allocation7 + $0x2f8] sm:$0xff] }
 0x268   :  { %2557 = vmatprep.subr.bf16.mxu0 %v3659_v39  ;;  %v757_v39 = vld [vmem:[#allocation7 + $0x58] sm:$0xff] }
 0x269   :  { %v3468_v51 = vcombine.low %v757_v39, %v761_v40  ;;  %v965_v32 = vld [vmem:[#allocation7 + $0x6d8] sm:$0xff] }
 0x26a   :  { %2517 = vmatpush2.bf16.msra.mxu1 %v3530_v44  ;;  %v3604_v44 = vcombine.low %v893_v33, %v897_v34  ;;  %v969_v33 = vld [vmem:[#allocation7 + $0x6f8] sm:$0xff] }
 0x26b   :  { %2558 = vmatpush2.bf16.msra.mxu0 %v3658_v45  ;;  %2518 = vmatprep.subr.bf16.mxu1 %v3523_v46  ;;  %v3469_v45 = vcombine.high %v757_v39, %v761_v40  ;;  %v3597_v46 = vcombine.high %v885_v41, %v889_v42  ;;  %v833_v39 = vld [vmem:[#allocation7 + $0x2b8] sm:$0xff] }
 0x26c   :  { %2559 = vmatprep.subr.bf16.mxu0 %v3651_v47  ;;  %v749_v47 = vld [vmem:[#allocation7 + $0x18] sm:$0xff] }
 0x26d   :  { %v3460_v61 = vcombine.low %v749_v47, %v753_v48  ;;  %v957_v40 = vld [vmem:[#allocation7 + $0x698] sm:$0xff] }
 0x26e   :  { %2519 = vmatpush2.bf16.msra.mxu1 %v3522_v53  ;;  %v3596_v53 = vcombine.low %v885_v41, %v889_v42  ;;  %v961_v41 = vld [vmem:[#allocation7 + $0x6b8] sm:$0xff] }
 0x26f   :  { %2560 = vmatpush2.bf16.msra.mxu0 %v3650_v55  ;;  %2570 = vmatprep.subr.bf16.mxu1 %v3517_v56  ;;  %v3461_v55 = vcombine.high %v749_v47, %v753_v48  ;;  %v3589_v56 = vcombine.high %v877_v49, %v881_v50  ;;  %v825_v47 = vld [vmem:[#allocation7 + $0x278] sm:$0xff] }
 0x270   :  { %2611 = vmatprep.subr.bf16.mxu0 %v3645_v57  ;;  %v869_v57 = vld [vmem:[#allocation7 + $0x3d8] sm:$0xff] }
 0x271   :  { %2521 = vmatmul.mubr.bf16.vlgmr.msra.gmra.mxu1 %v4278_v21  ;;  %v3580_v5 = vcombine.low %v869_v57, %v873_v58  ;;  %v949_v48 = vld [vmem:[#allocation7 + $0x658] sm:$0xff] }
 0x272   :  { %2562 = vmatmul.mubr.bf16.vlgmr.msra.gmra.mxu0 %v4280_v22  ;;  %2571 = vmatpush1.bf16.msra.mxu1 %v3516_v60  ;;  %v1001_v60 = vld [vmem:[#allocation7 + $0x7f8] sm:$0xff] }
 0x273   :  { %2602 = vmatprep.mubr.bf16.mxu1 %v4274_v19  ;;  %2612 = vmatpush1.bf16.msra.mxu0 %v3644_v63  ;;  %v3621_v19 = vcombine.high %v909_v12, %v913_v13  ;;  %v3581_v63 = vcombine.high %v869_v57, %v873_v58  ;;  %v985_v12 = vld [vmem:[#allocation7 + $0x778] sm:$0xff]  ;;  %v3572_v13 = vcombine.low %v861_v1, %v865_v2 }
 0x274   :  { %2643 = vmatprep.mubr.bf16.mxu0 %v4276_v20  ;;  %2572 = vmatprep.subr.bf16.mxu1 %v3509_v0  ;;  %v3492_v20 = vcombine.low %v781_v10, %v785_v11  ;;  %v3709_v0 = vcombine.high %v997_v59, %v1001_v60  ;;  %v857_v10 = vld [vmem:[#allocation7 + $0x378] sm:$0xff] }
 0x275   :  { %2613 = vmatprep.subr.bf16.mxu0 %v3637_v3  ;;  %v989_v3 = vld [vmem:[#allocation7 + $0x798] sm:$0xff] }
 0x276   :  { %2573 = vmatpush1.bf16.msra.mxu1 %v3508_v6  ;;  %v3708_v6 = vcombine.low %v997_v59, %v1001_v60  ;;  %v981_v11 = vld [vmem:[#allocation7 + $0x758] sm:$0xff] }
 0x277   :  { %2614 = vmatpush1.bf16.msra.mxu0 %v3636_v7  ;;  %2574 = vmatprep.subr.bf16.mxu1 %v3501_v8  ;;  %v3573_v7 = vcombine.high %v861_v1, %v865_v2  ;;  %v3701_v8 = vcombine.high %v989_v3, %v993_v4  ;;  %v953_v49 = vld [vmem:[#allocation7 + $0x678] sm:$0xff] }
 0x278   :  { %2615 = vmatprep.subr.bf16.mxu0 %v3629_v9  ;;  %v853_v9 = vld [vmem:[#allocation7 + $0x358] sm:$0xff] }
 0x279   :  { %v3564_v24 = vcombine.low %v853_v9, %v857_v10  ;;  %v817_v57 = vld [vmem:[#allocation7 + $0x238] sm:$0xff] }
 0x27a   :  { %2575 = vmatpush1.bf16.msra.mxu1 %v3500_v14  ;;  %v3700_v14 = vcombine.low %v989_v3, %v993_v4  ;;  %v941_v58 = vld [vmem:[#allocation7 + $0x618] sm:$0xff] }
 0x27b   :  { %2616 = vmatpush1.bf16.msra.mxu0 %v3628_v15  ;;  %2576 = vmatprep.subr.bf16.mxu1 %v3493_v16  ;;  %v3565_v15 = vcombine.high %v853_v9, %v857_v10  ;;  %v3693_v16 = vcombine.high %v981_v11, %v985_v12  ;;  %v945_v59 = vld [vmem:[#allocation7 + $0x638] sm:$0xff]  ;;  %v4015_v9 = vld [vmem:[#allocation8 + $0xf0] sm:$0xff]  }
 0x27c   :  { %2617 = vmatprep.subr.bf16.mxu0 %v3621_v19  ;;  %v845_v19 = vld [vmem:[#allocation7 + $0x318] sm:$0xff]  ;;  %v3652_v1 = vcombine.low %v941_v58, %v945_v59 }
 0x27d   :  { %v3556_v34 = vcombine.low %v845_v19, %v849_v17  ;;  %v3997_v2 = vld [vmem:[#allocation8 + $0x78] sm:$0xff]  }
 0x27e   :  { %2577 = vmatpush1.bf16.msra.mxu1 %v3492_v20  ;;  %v3692_v20 = vcombine.low %v981_v11, %v985_v12  ;;  %v4013_v3 = vld [vmem:[#allocation8 + $0xf8] sm:$0xff]   ;;  %v4000_v12 = vld [vmem:[#allocation8 + $0x30] sm:$0xff]  }
 0x27f   :  { %2618 = vmatpush1.bf16.msra.mxu0 %v3620_v25  ;;  %2578 = vmatprep.subr.bf16.mxu1 %v3485_v26  ;;  %v3557_v25 = vcombine.high %v845_v19, %v849_v17  ;;  %v3685_v26 = vcombine.high %v973_v18, %v977_v23  ;;  %v3998_v4 = vld [vmem:[#allocation8 + $0x38] sm:$0xff]   ;;  %v4017_v17 = vld [vmem:[#allocation8 + $0xe8] sm:$0xff]  }
 0x280   :  { %2619 = vmatprep.subr.bf16.mxu0 %v3613_v27  ;;  %v837_v27 = vld [vmem:[#allocation7 + $0x2d8] sm:$0xff] }
 0x281   :  { %v3548_v42 = vcombine.low %v837_v27, %v841_v30 }
 0x282   :  { %2579 = vmatpush1.bf16.msra.mxu1 %v3484_v35  ;;  %v3684_v35 = vcombine.low %v973_v18, %v977_v23 }
 0x283   :  { %2620 = vmatpush1.bf16.msra.mxu0 %v3612_v36  ;;  %2580 = vmatprep.subr.bf16.mxu1 %v3477_v37  ;;  %v3549_v36 = vcombine.high %v837_v27, %v841_v30  ;;  %v3677_v37 = vcombine.high %v965_v32, %v969_v33  ;;  %v4019_v27 = vld [vmem:[#allocation8 + $0xe0] sm:$0xff]  }
 0x284   :  { %2621 = vmatprep.subr.bf16.mxu0 %v3605_v38  ;;  %v829_v38 = vld [vmem:[#allocation7 + $0x298] sm:$0xff] }
 0x285   :  { %v3540_v50 = vcombine.low %v829_v38, %v833_v39 }
 0x286   :  { %2581 = vmatpush1.bf16.msra.mxu1 %v3476_v43  ;;  %v3676_v43 = vcombine.low %v965_v32, %v969_v33  ;;  %v4004_v32 = vld [vmem:[#allocation8 + $0x20] sm:$0xff]  }
 0x287   :  { %2622 = vmatpush1.bf16.msra.mxu0 %v3604_v44  ;;  %2582 = vmatprep.subr.bf16.mxu1 %v3469_v45  ;;  %v3541_v44 = vcombine.high %v829_v38, %v833_v39  ;;  %v3669_v45 = vcombine.high %v957_v40, %v961_v41  ;;  %v4006_v38 = vld [vmem:[#allocation8 + $0x18] sm:$0xff]  }
 0x288   :  { %2623 = vmatprep.subr.bf16.mxu0 %v3597_v46  ;;  %v821_v46 = vld [vmem:[#allocation7 + $0x258] sm:$0xff] }
 0x289   :  { %v3532_v60 = vcombine.low %v821_v46, %v825_v47 }
 0x28a   :  { %2583 = vmatpush1.bf16.msra.mxu1 %v3468_v51  ;;  %v3668_v51 = vcombine.low %v957_v40, %v961_v41  ;;  %v4007_v40 = vld [vmem:[#allocation8 + $0x50] sm:$0xff]   ;;  %v4022_v41 = vld [vmem:[#allocation8 + $0x98] sm:$0xff]  }
 0x28b   :  { %2624 = vmatpush1.bf16.msra.mxu0 %v3596_v53  ;;  %2584 = vmatprep.subr.bf16.mxu1 %v3461_v55  ;;  %v3533_v53 = vcombine.high %v821_v46, %v825_v47  ;;  %v3661_v55 = vcombine.high %v949_v48, %v953_v49  ;;  %v4025_v46 = vld [vmem:[#allocation8 + $0xc8] sm:$0xff]  }
 0x28c   :  { %2625 = vmatprep.subr.bf16.mxu0 %v3589_v56  ;;  %v813_v56 = vld [vmem:[#allocation7 + $0x218] sm:$0xff]  ;;  %v4010_v47 = vld [vmem:[#allocation8 + $0x8] sm:$0xff]  }
 0x28e   :  { %2585 = vmatpush1.bf16.msra.mxu1 %v3460_v61  ;;  %v3660_v61 = vcombine.low %v949_v48, %v953_v49  ;;  %v4011_v49 = vld [vmem:[#allocation8 + $0x40] sm:$0xff]  }
 0x28f   :  { %2626 = vmatpush1.bf16.msra.mxu0 %v3588_v62  ;;  %2586 = vmatprep.subr.bf16.mxu1 %v3581_v63  ;;  %v3525_v62 = vcombine.high %v813_v56, %v817_v57  ;;  %v3653_v63 = vcombine.high %v941_v58, %v945_v59  ;;  %v4045_v58 = vld [vmem:[#allocation8 + $0x1f8] sm:$0xff]  }
 0x290   :  { %2627 = vmatprep.subr.bf16.mxu0 %v3709_v0  ;;  %v3524_v0 = vcombine.low %v813_v56, %v817_v57  ;;  %v4028_v56 = vld [vmem:[#allocation8 + $0x80] sm:$0xff]   ;;  %v4029_v57 = vld [vmem:[#allocation8 + $0x178] sm:$0xff]  }
 0x291   :  { %v4030_v59 = vld [vmem:[#allocation8 + $0x138] sm:$0xff]  }
 0x292   :  { %2587 = vmatpush2.bf16.msra.mxu1 %v3580_v5  ;;  %v4299_v5 = vld [vmem:[%s4333_s6] sm:$0xff] }
 0x293   :  { %2628 = vmatpush2.bf16.msra.mxu0 %v3708_v6  ;;  %2588 = vmatprep.subr.bf16.mxu1 %v3573_v7  ;;  %v3999_v6 = vld [vmem:[#allocation8 + $0x70] sm:$0xff]   ;;  %v4014_v7 = vld [vmem:[#allocation8 + $0xb8] sm:$0xff]   ;;  %v1007_v33 = vrot.slane %v4299_v5, %v4253_v29 }
 0x294   :  { %2629 = vmatprep.subr.bf16.mxu0 %v3701_v8  ;;  %v1011_v8 = vrot.slane %v4299_v5, %v4259_v31 }
 0x296   :  { %2589 = vmatpush2.bf16.msra.mxu1 %v3572_v13 }
 0x297   :  { %2630 = vmatpush2.bf16.msra.mxu0 %v3700_v14  ;;  %2590 = vmatprep.subr.bf16.mxu1 %v3565_v15  ;;  %v4001_v15 = vld [vmem:[#allocation8 + $0x68] sm:$0xff]  }
 0x298   :  { %2631 = vmatprep.subr.bf16.mxu0 %v3693_v16  ;;  %v4016_v16 = vld [vmem:[#allocation8 + $0xb0] sm:$0xff]  }
 0x29a   :  { %2591 = vmatpush2.bf16.msra.mxu1 %v3564_v24 }
 0x29b   :  { %2632 = vmatpush2.bf16.msra.mxu0 %v3692_v20  ;;  %2592 = vmatprep.subr.bf16.mxu1 %v3557_v25  ;;  %v4018_v25 = vld [vmem:[#allocation8 + $0xa8] sm:$0xff]  }
 0x29c   :  { %2633 = vmatprep.subr.bf16.mxu0 %v3685_v26 }
 0x29e   :  { %2593 = vmatpush2.bf16.msra.mxu1 %v3556_v34  ;;  %v4005_v34 = vld [vmem:[#allocation8 + $0x58] sm:$0xff]  }
 0x29f   :  { %2634 = vmatpush2.bf16.msra.mxu0 %v3684_v35  ;;  %2594 = vmatprep.subr.bf16.mxu1 %v3549_v36  ;;  %v4020_v35 = vld [vmem:[#allocation8 + $0xa0] sm:$0xff]  }
 0x2a0   :  { %2635 = vmatprep.subr.bf16.mxu0 %v3677_v37  ;;  %v4021_v37 = vld [vmem:[#allocation8 + $0xd8] sm:$0xff]  }
 0x2a2   :  { %2595 = vmatpush2.bf16.msra.mxu1 %v3548_v42  ;;  %v4023_v42 = vld [vmem:[#allocation8 + $0xd0] sm:$0xff]  }
 0x2a3   :  { %2636 = vmatpush2.bf16.msra.mxu0 %v3676_v43  ;;  %2596 = vmatprep.subr.bf16.mxu1 %v3541_v44  ;;  %v4008_v43 = vld [vmem:[#allocation8 + $0x10] sm:$0xff]   ;;  %v4009_v44 = vld [vmem:[#allocation8 + $0x48] sm:$0xff]  }
 0x2a4   :  { %2637 = vmatprep.subr.bf16.mxu0 %v3669_v45  ;;  %v4024_v45 = vld [vmem:[#allocation8 + $0x90] sm:$0xff]  }
 0x2a6   :  { %2597 = vmatpush2.bf16.msra.mxu1 %v3540_v50  ;;  %v4026_v50 = vld [vmem:[#allocation8 + $0x88] sm:$0xff]  }
 0x2a7   :  { %2638 = vmatpush2.bf16.msra.mxu0 %v3668_v51  ;;  %2598 = vmatprep.subr.bf16.mxu1 %v3533_v53  ;;  %v4027_v51 = vld [vmem:[#allocation8 + $0xc0] sm:$0xff]  }
 0x2a8   :  { %2639 = vmatprep.subr.bf16.mxu0 %v3661_v55  ;;  %v4012_v53 = vld [vmem:[#allocation8] sm:$0xff]  }
 0x2aa   :  { %2599 = vmatpush2.bf16.msra.mxu1 %v3532_v60 }
 0x2ab   :  { %2640 = vmatpush2.bf16.msra.mxu0 %v3660_v61  ;;  %2600 = vmatprep.subr.bf16.mxu1 %v3525_v62  ;;  %v4031_v61 = vld [vmem:[#allocation8 + $0x170] sm:$0xff]  }
 0x2ac   :  { %2641 = vmatprep.subr.bf16.mxu0 %v3653_v63  ;;  %v4032_v62 = vld [vmem:[#allocation8 + $0x130] sm:$0xff]   ;;  %v4033_v63 = vld [vmem:[#allocation8 + $0x168] sm:$0xff]  }
 0x2ae   :  { %2601 = vmatpush2.bf16.msra.mxu1 %v3524_v0  ;;  %v4034_v0 = vld [vmem:[#allocation8 + $0x128] sm:$0xff]  }
 0x2af   :  { %2642 = vmatpush2.bf16.msra.mxu0 %v3652_v1  ;;  %3775 = vmatprep.subr.bf16.mxu1 %v3997_v2  ;;  %v4035_v1 = vld [vmem:[#allocation8 + $0x160] sm:$0xff]  }
 0x2b0   :  { %3797 = vmatprep.subr.bf16.mxu0 %v4013_v3  ;;  %v4036_v2 = vld [vmem:[#allocation8 + $0x120] sm:$0xff]   ;;  %v4037_v3 = vld [vmem:[#allocation8 + $0x158] sm:$0xff]  }
 0x2b1   :  { %2603 = vmatmul.mubr.bf16.vlgmr.msra.gmra.mxu1 %v4278_v21  ;;  %v2358_v10 = vpop.f32.mrf.mxu1  ;;  %v2399_v11 = vpop.f32.mrf.mxu0  ;;  %v4002_v21 = vld [vmem:[#allocation8 + $0x28] sm:$0xff]  }
 0x2b2   :  { %2644 = vmatmul.mubr.bf16.vlgmr.msra.gmra.mxu0 %v4280_v22  ;;  %3776 = vmatpush3.bf16.msra.mxu1 %v3998_v4  ;;  %v4003_v22 = vld [vmem:[#allocation8 + $0x60] sm:$0xff]   ;;  %v2359_v39 = vadd.f32 %v2358_v10, %v1007_v33  ;;  %v4038_v4 = vld [vmem:[#allocation8 + $0x118] sm:$0xff]  }
 0x2b3   :  { %v2360_v13 = vpop.f32.mrf.mxu1  ;;  %v2401_v14 = vpop.f32.mrf.mxu0  ;;  %3777 = vmatprep.subr.bf16.mxu1 %v3999_v6  ;;  %3798 = vmatpush3.bf16.msra.mxu0 %v4014_v7  ;;  %v4039_v6 = vld [vmem:[#allocation8 + $0x150] sm:$0xff]   ;;  %v4043_v10 = vld [vmem:[#allocation8 + $0x140] sm:$0xff]  }
 0x2b4   :  { %v2361_v19 = vadd.f32 %v2360_v13, %v1011_v8  ;;  %3799 = vmatprep.subr.bf16.mxu0 %v4015_v9  ;;  %v2400_v29 = vadd.f32 %v2399_v11, %v2359_v39  ;;  %v4040_v7 = vld [vmem:[#allocation8 + $0x110] sm:$0xff]   ;;  %v4041_v8 = vld [vmem:[#allocation8 + $0x148] sm:$0xff]   ;;  %v4044_v11 = vld [vmem:[#allocation8 + $0x100] sm:$0xff]   ;;  %v1019_v13 = vrot.slane %v4299_v5, %v326_v54 }
 0x2b5   :  { %v2362_v31 = vpop.f32.mrf.mxu1  ;;  %v2403_v18 = vpop.f32.mrf.mxu0  ;;  %v4042_v9 = vld [vmem:[#allocation8 + $0x108] sm:$0xff]   ;;  %v4047_v54 = vld [vmem:[#allocation8 + $0x1f0] sm:$0xff]   ;;  %v4053_v39 = vld [vmem:[#allocation8 + $0x1d8] sm:$0xff]  }
 0x2b6   :  { %v2402_v23 = vadd.f32 %v2401_v14, %v2361_v19  ;;  %3778 = vmatpush3.bf16.msra.mxu1 %v4000_v12  ;;  %v2652_v48 = vmul.f32 0.2, %v2400_v29  ;;  %v1015_v12 = vrot.slane %v4299_v5, %v322_v52 }
 0x2b7   :  { %v2363_v24 = vpop.f32.mrf.mxu1  ;;  %v2404_v20 = vpop.f32.mrf.mxu0  ;;  %3779 = vmatprep.subr.bf16.mxu1 %v4001_v15  ;;  %3800 = vmatpush3.bf16.msra.mxu0 %v4016_v16 }
 0x2b8   :  { %v2653_v26 = vmul.f32 0.2, %v2402_v23  ;;  %3801 = vmatprep.subr.bf16.mxu0 %v4017_v17  ;;  %v2660_v55 = vmax.f32 %v2400_v29, %v2652_v48  ;;  %v4058_v29 = vld [vmem:[#allocation8 + $0x188] sm:$0xff]  }
 0x2ba   :  { %v2661_v30 = vmax.f32 %v2402_v23, %v2653_v26  ;;  %3780 = vmatpush3.bf16.msra.mxu1 %v4002_v21  ;;  %v2668_v60 = vpack.c.bf16 %v2660_v55, %v2660_v55 }
 0x2bb   :  { %3781 = vmatprep.subr.bf16.mxu1 %v4003_v22  ;;  %3802 = vmatpush3.bf16.msra.mxu0 %v4018_v25 }
 0x2bc   :  { %v2669_v36 = vpack.c.bf16 %v2661_v30, %v2661_v30  ;;  %3803 = vmatprep.subr.bf16.mxu0 %v4019_v27 }
 0x2be   :  { %3782 = vmatpush3.bf16.msra.mxu1 %v4004_v32  ;;  %3227 = vmatprep.mubr.bf16.mxu1 %v2669_v36  ;;  %v4046_v32 = vld [vmem:[#allocation8 + $0x1b8] sm:$0xff]   ;;  %v4050_v36 = vld [vmem:[#allocation8 + $0x1a8] sm:$0xff]  }
 0x2bf   :  { %3783 = vmatprep.subr.bf16.mxu1 %v4005_v34  ;;  %3804 = vmatpush3.bf16.msra.mxu0 %v4020_v35  ;;  %v4048_v34 = vld [vmem:[#allocation8 + $0x1b0] sm:$0xff]   ;;  %v4049_v35 = vld [vmem:[#allocation8 + $0x1e8] sm:$0xff]  }
 0x2c0   :  { %3805 = vmatprep.subr.bf16.mxu0 %v4021_v37  ;;  %v4051_v37 = vld [vmem:[#allocation8 + $0x1e0] sm:$0xff]  }
 0x2c2   :  { %3784 = vmatpush3.bf16.msra.mxu1 %v4006_v38  ;;  %v4052_v38 = vld [vmem:[#allocation8 + $0x1a0] sm:$0xff]  }
 0x2c3   :  { %3785 = vmatprep.subr.bf16.mxu1 %v4007_v40  ;;  %3806 = vmatpush3.bf16.msra.mxu0 %v4022_v41  ;;  %v4054_v40 = vld [vmem:[#allocation8 + $0x198] sm:$0xff]   ;;  %v4055_v41 = vld [vmem:[#allocation8 + $0x1d0] sm:$0xff]  }
 0x2c4   :  { %3807 = vmatprep.subr.bf16.mxu0 %v4023_v42  ;;  %v4056_v42 = vld [vmem:[#allocation8 + $0x190] sm:$0xff]  }
 0x2c6   :  { %3786 = vmatpush3.bf16.msra.mxu1 %v4008_v43  ;;  %v4057_v43 = vld [vmem:[#allocation8 + $0x1c8] sm:$0xff]  }
 0x2c7   :  { %3787 = vmatprep.subr.bf16.mxu1 %v4009_v44  ;;  %3808 = vmatpush3.bf16.msra.mxu0 %v4024_v45  ;;  %v4059_v44 = vld [vmem:[#allocation8 + $0x1c0] sm:$0xff]  }
 0x2c8   :  { %3809 = vmatprep.subr.bf16.mxu0 %v4025_v46  ;;  %v4060_v45 = vld [vmem:[#allocation8 + $0x180] sm:$0xff]   ;;  %v1022_v46 = vsub.s32 4, %v4250_v28 }
 0x2ca   :  { %3788 = vmatpush3.bf16.msra.mxu1 %v4010_v47  ;;  %v1026_v47 = vsub.s32 5, %v4250_v28  ;;  %v1023_v48 = vrot.slane %v4299_v5, %v1022_v46 }
 0x2cb   :  { %3789 = vmatprep.subr.bf16.mxu1 %v4011_v49  ;;  %3810 = vmatpush3.bf16.msra.mxu0 %v4026_v50 }
 0x2cc   :  { %3811 = vmatprep.subr.bf16.mxu0 %v4027_v51  ;;  %v1027_v49 = vrot.slane %v4299_v5, %v1026_v47 }
 0x2ce   :  { %3790 = vmatpush3.bf16.msra.mxu1 %v4012_v53 }
 0x2cf   :  { %3812 = vmatpush3.bf16.msra.mxu0 %v4028_v56  ;;  %3819 = vmatprep.subr.bf16.mxu1 %v4029_v57 }
 0x2d0   :  { %3841 = vmatprep.subr.bf16.mxu0 %v4045_v58 }
 0x2d1   :  { %3228 = vmatmul.mubr.bf16.vlgmr.msra.gmra.mxu1 %v2668_v60 }
 0x2d2   :  { %3820 = vmatpush3.bf16.msra.mxu1 %v4030_v59 }
 0x2d3   :  { %3821 = vmatprep.subr.bf16.mxu1 %v4031_v61 }
 0x2d6   :  { %3822 = vmatpush3.bf16.msra.mxu1 %v4032_v62 }
 0x2d7   :  { %3823 = vmatprep.subr.bf16.mxu1 %v4033_v63 }
 0x2da   :  { %3824 = vmatpush3.bf16.msra.mxu1 %v4034_v0 }
 0x2db   :  { %3825 = vmatprep.subr.bf16.mxu1 %v4035_v1 }
 0x2de   :  { %3826 = vmatpush3.bf16.msra.mxu1 %v4036_v2 }
 0x2df   :  { %3827 = vmatprep.subr.bf16.mxu1 %v4037_v3 }
 0x2e2   :  { %3828 = vmatpush3.bf16.msra.mxu1 %v4038_v4 }
 0x2e3   :  { %3829 = vmatprep.subr.bf16.mxu1 %v4039_v6 }
 0x2e6   :  { %3830 = vmatpush3.bf16.msra.mxu1 %v4040_v7  ;;  %v1030_v7 = vsub.s32 6, %v4250_v28 }
 0x2e7   :  { %3831 = vmatprep.subr.bf16.mxu1 %v4041_v8  ;;  %v1034_v8 = vsub.s32 7, %v4250_v28 }
 0x2ea   :  { %3832 = vmatpush3.bf16.msra.mxu1 %v4042_v9  ;;  %v1031_v9 = vrot.slane %v4299_v5, %v1030_v7 }
 0x2eb   :  { %3833 = vmatprep.subr.bf16.mxu1 %v4043_v10  ;;  %v1035_v10 = vrot.slane %v4299_v5, %v1034_v8 }
 0x2ee   :  { %3834 = vmatpush3.bf16.msra.mxu1 %v4044_v11 }
 0x2f1   :  { %v2440_v14 = vpop.f32.mrf.mxu1  ;;  %v2481_v15 = vpop.f32.mrf.mxu0 }
 0x2f2   :  { %v2441_v16 = vadd.f32 %v2440_v14, %v1015_v12 }
 0x2f3   :  { %v2442_v19 = vpop.f32.mrf.mxu1  ;;  %v2483_v17 = vpop.f32.mrf.mxu0 }
 0x2f4   :  { %v2482_v31 = vadd.f32 %v2481_v15, %v2441_v16  ;;  %v2443_v18 = vadd.f32 %v2442_v19, %v1019_v13 }
 0x2f5   :  { %v2444_v23 = vpop.f32.mrf.mxu1  ;;  %v2485_v21 = vpop.f32.mrf.mxu0 }
 0x2f6   :  { %v2654_v24 = vmul.f32 0.2, %v2482_v31  ;;  %v2484_v20 = vadd.f32 %v2483_v17, %v2443_v18 }
 0x2f7   :  { %v2445_v22 = vpop.f32.mrf.mxu1  ;;  %v2486_v25 = vpop.f32.mrf.mxu0 }
 0x2f8   :  { %v2655_v26 = vmul.f32 0.2, %v2484_v20  ;;  %v2662_v52 = vmax.f32 %v2482_v31, %v2654_v24 }
 0x2fa   :  { %v2663_v27 = vmax.f32 %v2484_v20, %v2655_v26  ;;  %v2670_v33 = vpack.c.bf16 %v2662_v52, %v2662_v52 }
 0x2fc   :  { %v2671_v30 = vpack.c.bf16 %v2663_v27, %v2663_v27 }
 0x2fe   :  { %3267 = vmatprep.mubr.bf16.mxu0 %v2671_v30 }
 0x2ff   :  { %3268 = vmatmul.mubr.bf16.vlgmr.msra.gmra.mxu0 %v2670_v33  ;;  %v3710_v33 = vld [vmem:[%s4335_s8] ss:$0 sm:$0xff]  ;;  %s4184_s8 = smov [#allocation10]  }
 0x300   :  { %3842 = vmatpush3.bf16.msra.mxu0 %v4046_v32  ;;  %s3363_s18 = sshll.u32 %s4184_s8, 4  ;;  %s3364_s18 = int_to_ptr.vmem [resolvable:$true] %s3363_s18 }
 0x301   :  { %3843 = vmatprep.subr.bf16.mxu0 %v4047_v54  ;;  %s4143_s19 = scalar_lea.vmem %s3364_s18, 128  ;;  %p4148_p7 = scmp.lt.s32.totalorder %s3364_s18, %s3364_s18 }
 0x302   :  { %p4144_p6 = scmp.ne.s32.totalorder %s3364_s18, %s4143_s19  ;;  %p4149_p8 = scmp.lt.s32.totalorder %s4143_s19, %s4143_s19 }
 0x304   :  { %3844 = vmatpush3.bf16.msra.mxu0 %v4048_v34  ;;  %p4150_p9 = por %p4149_p8, %p4148_p7 }
 0x305   :  { %3845 = vmatprep.subr.bf16.mxu0 %v4049_v35 }
 0x306   :  { %p4151_p10 = pnand %p4150_p9, %p4144_p6 }
 0x308   :  { %3846 = vmatpush3.bf16.msra.mxu0 %v4050_v36 }
 0x309   :  { %3847 = vmatprep.subr.bf16.mxu0 %v4051_v37 }
 0x30c   :  { %3848 = vmatpush3.bf16.msra.mxu0 %v4052_v38 }
 0x30d   :  { %3849 = vmatprep.subr.bf16.mxu0 %v4053_v39 }
 0x310   :  { %3850 = vmatpush3.bf16.msra.mxu0 %v4054_v40 }
 0x311   :  { %3851 = vmatprep.subr.bf16.mxu0 %v4055_v41 }
 0x314   :  { %3852 = vmatpush3.bf16.msra.mxu0 %v4056_v42 }
 0x315   :  { %3853 = vmatprep.subr.bf16.mxu0 %v4057_v43 }
 0x318   :  { %3854 = vmatpush3.bf16.msra.mxu0 %v4058_v29 }
 0x319   :  { %3855 = vmatprep.subr.bf16.mxu0 %v4059_v44 }
 0x31c   :  { %3856 = vmatpush3.bf16.msra.mxu0 %v4060_v45 }
 0x331   :  { %v2522_v50 = vpop.f32.mrf.mxu1 }
 0x332   :  { %v2523_v51 = vadd.f32 %v2522_v50, %v1023_v48  ;;  %v2563_v53 = vpop.f32.mrf.mxu0 }
 0x333   :  { %v2524_v55 = vpop.f32.mrf.mxu1 }
 0x334   :  { %v2564_v56 = vadd.f32 %v2563_v53, %v2523_v51  ;;  %v2525_v57 = vadd.f32 %v2524_v55, %v1027_v49  ;;  %v2565_v58 = vpop.f32.mrf.mxu0 }
 0x335   :  { %v2526_v59 = vpop.f32.mrf.mxu1 }
 0x336   :  { %v2656_v60 = vmul.f32 0.2, %v2564_v56  ;;  %v2566_v61 = vadd.f32 %v2565_v58, %v2525_v57  ;;  %v2567_v62 = vpop.f32.mrf.mxu0 }
 0x337   :  { %v2527_v63 = vpop.f32.mrf.mxu1 }
 0x338   :  { %v2657_v0 = vmul.f32 0.2, %v2566_v61  ;;  %v2568_v1 = vpop.f32.mrf.mxu0  ;;  %v2664_v2 = vmax.f32 %v2564_v56, %v2656_v60 }
 0x33a   :  { %v2665_v3 = vmax.f32 %v2566_v61, %v2657_v0  ;;  %v2672_v6 = vpack.c.bf16 %v2664_v2, %v2664_v2 }
 0x33c   :  { %v2673_v4 = vpack.c.bf16 %v2665_v3, %v2665_v3 }
 0x33e   :  { %3307 = vmatprep.mubr.bf16.mxu1 %v2673_v4 }
 0x33f   :  { %3308 = vmatmul.mubr.bf16.vlgmr.msra.gmra.mxu1 %v2672_v6 }
 0x371   :  { %v2604_v11 = vpop.f32.mrf.mxu1 }
 0x372   :  { %v2605_v12 = vadd.f32 %v2604_v11, %v1031_v9  ;;  %v2645_v13 = vpop.f32.mrf.mxu0 }
 0x373   :  { %v2606_v14 = vpop.f32.mrf.mxu1 }
 0x374   :  { %v2646_v15 = vadd.f32 %v2645_v13, %v2605_v12  ;;  %v2607_v16 = vadd.f32 %v2606_v14, %v1035_v10  ;;  %v2647_v19 = vpop.f32.mrf.mxu0 }
 0x375   :  { %v2608_v17 = vpop.f32.mrf.mxu1 }
 0x376   :  { %v2658_v31 = vmul.f32 0.2, %v2646_v15  ;;  %v2648_v18 = vadd.f32 %v2647_v19, %v2607_v16  ;;  %v2649_v23 = vpop.f32.mrf.mxu0 }
 0x377   :  { %v2609_v21 = vpop.f32.mrf.mxu1 }
 0x378   :  { %v2659_v24 = vmul.f32 0.2, %v2648_v18  ;;  %v2650_v20 = vpop.f32.mrf.mxu0  ;;  %v2666_v22 = vmax.f32 %v2646_v15, %v2658_v31 }
 0x37a   :  { %v2667_v28 = vmax.f32 %v2648_v18, %v2659_v24  ;;  %v2674_v26 = vpack.c.bf16 %v2666_v22, %v2666_v22 }
 0x37c   :  { %v2675_v25 = vpack.c.bf16 %v2667_v28, %v2667_v28 }
 0x37e   :  { %3347 = vmatprep.mubr.bf16.mxu0 %v2675_v25 }
 0x37f   :  { %3348 = vmatmul.mubr.bf16.vlgmr.msra.gmra.mxu0 %v2674_v26 }
 0x391   :  { %v3791_v5 = vpop.f32.mrf.mxu1 }
 0x393   :  { %v3792_v52 = vpop.f32.mrf.mxu1 }
 0x394   :  { %v3793_v27 = vadd.f32 %v3792_v52, %v3791_v5 }
 0x395   :  { %v3794_v30 = vpop.f32.mrf.mxu1 }
 0x396   :  { %v3230_v35 = vadd.f32 %v3793_v27, %v3710_v33 }
 0x397   :  { %v3795_v32 = vpop.f32.mrf.mxu1 }
 0x3bf   :  { %v3813_v54 = vpop.f32.mrf.mxu0 }
 0x3c1   :  { %v3814_v34 = vpop.f32.mrf.mxu0 }
 0x3c2   :  { %v3815_v36 = vadd.f32 %v3814_v34, %v3813_v54 }
 0x3c3   :  { %v3816_v37 = vpop.f32.mrf.mxu0 }
 0x3c4   :  { %v3270_v38 = vadd.f32 %v3815_v36, %v3230_v35 }
 0x3c5   :  { %v3817_v39 = vpop.f32.mrf.mxu0 }
 0x3ff   :  { %v3835_v40 = vpop.f32.mrf.mxu1 }
 0x401   :  { %v3836_v41 = vpop.f32.mrf.mxu1 }
 0x402   :  { %v3837_v42 = vadd.f32 %v3836_v41, %v3835_v40 }
 0x403   :  { %v3838_v43 = vpop.f32.mrf.mxu1 }
 0x404   :  { %v3310_v29 = vadd.f32 %v3837_v42, %v3270_v38 }
 0x405   :  { %v3839_v44 = vpop.f32.mrf.mxu1 }
 0x43f   :  { %v3857_v45 = vpop.f32.mrf.mxu0 }
 0x441   :  { %v3858_v46 = vpop.f32.mrf.mxu0 }
 0x442   :  { %v3859_v47 = vadd.f32 %v3858_v46, %v3857_v45 }
 0x443   :  { %v3860_v48 = vpop.f32.mrf.mxu0 }
 0x444   :  { %v3350_v49 = vadd.f32 %v3859_v47, %v3310_v29 }
 0x445   :  { %v3861_v50 = vpop.f32.mrf.mxu0 }
 0x446   :  { %4061 = vtanh.f32 %v3350_v49 }
 0x453   :  { %v4062_v51 = vpop.eup %4061 }
 0x454   :  { %3356 = vst [vmem:[#allocation10] sm:$0xff] %v4062_v51 }
 0x455   :  { %4154 = shalt.err (!%p4151_p10)
}
 0x456   :  { %3366 = dma.vmem_to_hbm [thread:$0]  %s3364_s18, 128, %s4336_s9, [#allocation4]  }
 0x457   :  { %4169 = dma.done.wait [#allocation4], 128  }
 0x458   :  { %4170 = vsyncadd [#allocation4], 4294967168 }
 0x459   :  { %3370 = vsyncpa [#allocation3], 1 }
 0x45a   :  { %3371 = vsyncpa [#allocation6], 1 }
 0x45b   :  { %3372 = vsyncpa [#allocation9], 1 }
 0x45c   :  { %3373 = vsyncpa [#allocation4], 1 }

</bundles_post_ra>
